<compile_context>
chip_gen: v5e
topology: v5e:2x2
jax: 0.10.0
libtpu: 0.0.40
codegen_flags: <defaults>
</compile_context>

<pallas_src>
import functools

import jax
import jax.numpy as jnp
from jax.experimental import pallas as pl
from jax.experimental.pallas import tpu as pltpu

LANES = 128    # lane width the agg_out axis is padded to
TB_MAX = 128   # bags per grid step (sweep 64-256; 128 amortizes step overhead well)


def _attention_in_bag_kernel(bags_ref, w1_ref, b1_ref, w2_ref, out_ref, *, tb, n):
    # bags_ref : (tb*n, d_in)  streamed block of tb bags, flattened on the host
    # w1_ref   : (d_in, d_pad) grid-invariant (constant index_map), fetched once
    # b1_ref   : (1, d_pad)
    # w2_ref   : (1, d_pad)    second Linear's weight (padded lanes are zero)
    # out_ref  : (tb, d_pad)
    d_pad = w1_ref.shape[-1]

    # ascend_dim + LeakyReLU(0.2): a single big MXU matmul (good row utilization).
    # The f32 cast matches `bag.float()` in the module (in-kernel, no extra HBM pass).
    x = bags_ref[...].astype(jnp.float32)                       # (tb*n, d_in)
    h = jnp.dot(x, w1_ref[...], preferred_element_type=jnp.float32)  # (tb*n, d_pad)
    h = h + b1_ref[...]
    h = jnp.where(h > 0, h, 0.2 * h)                            # LeakyReLU(0.2)

    # Per-bag view; with n a multiple of 8 this sublane split is a free view.
    hb = h.reshape(tb, n, d_pad)                                # (tb, n, d_pad)

    # compute_e: degenerate (d_pad, 1) Linear -> VPU multiply + lane reduction.
    # b2 is dropped inside the kernel: softmax is shift-invariant in the logits.
    e = jnp.sum(hb * w2_ref[...], axis=-1)                      # (tb, n) dense logits

    # Per-bag softmax over the n instances (exact denominator; per-bag scalar work).
    m = jnp.max(e, axis=-1, keepdims=True)                      # (tb, 1)
    p = jnp.exp(e - m)                                          # (tb, n)
    alpha = p / jnp.sum(p, axis=-1, keepdims=True)              # (tb, n)

    # out[b, :] = sum_n alpha[b, n] * h[b, n, :]   (VPU multiply + sublane reduce)
    out_ref[...] = jnp.sum(alpha[:, :, None] * hb, axis=1)      # (tb, d_pad)


def attention_in_bag_batched(bags, w1, b1, w2, b2=None, *, tb_max=TB_MAX):
    """Batched AttentionInBag.

    bags: (B, N, agg_in); w1: (agg_in, agg_out); b1: (1, agg_out) or (agg_out,);
    w2: (agg_out, 1) or (agg_out,); b2 is accepted for API parity but ignored
    (a constant logit shift is a softmax no-op). Returns (B, agg_out) f32.
    """
    del b2  # mathematically irrelevant to the output (softmax shift invariance)
    B, N, d_in = bags.shape
    d_out = w1.shape[1]
    d_pad = pl.cdiv(d_out, LANES) * LANES

    # Block of tb bags per grid step; clamp so a single-step grid never has a
    # block larger than the array (ragged LAST blocks are handled by masking).
    tb = min(tb_max, B)
    grid = pl.cdiv(B, tb)

    # Zero-pad agg_out to a full lane width (lane-dense, unmasked output stores).
    w1p = jnp.zeros((d_in, d_pad), jnp.float32).at[:, :d_out].set(w1.astype(jnp.float32))
    b1p = jnp.zeros((1, d_pad), jnp.float32).at[:, :d_out].set(
        jnp.reshape(b1, (1, d_out)).astype(jnp.float32))
    w2p = jnp.zeros((1, d_pad), jnp.float32).at[:, :d_out].set(
        jnp.reshape(w2, (1, d_out)).astype(jnp.float32))

    # Flatten bags to 2-D (metadata-only reshape for a contiguous array) so the
    # kernel's first Linear is one (tb*N, d_in) x (d_in, d_pad) matmul.
    bags_flat = bags.reshape(B * N, d_in)

    kernel = functools.partial(_attention_in_bag_kernel, tb=tb, n=N)

    # Explicit VMEM budget: double-buffered bag/out blocks + resident weights
    # + the h intermediate, with headroom.  Capped at 32 MiB (safe on v7x's
    # 64 MiB physical VMEM and v5e's smaller scoped default).
    itemsize = jnp.dtype(bags.dtype).itemsize
    bag_block = tb * N * d_in * itemsize
    out_block = tb * d_pad * 4
    w_bytes = (d_in + 2) * d_pad * 4
    h_bytes = tb * N * d_pad * 4
    vmem_limit = int(min(32 * 1024 * 1024,
                         max(4 * 1024 * 1024,
                             4 * (bag_block + out_block + w_bytes + h_bytes))))

    cost = pl.CostEstimate(
        flops=2 * B * N * d_pad * (d_in + 2),
        transcendentals=B * N,
        bytes_accessed=B * N * d_in * itemsize + B * d_pad * 4 + (d_in + 2) * d_pad * 4,
    )

    out = pl.pallas_call(
        kernel,
        grid=(grid,),
        in_specs=[
            pl.BlockSpec((tb * N, d_in), lambda g: (g, 0)),    # streamed bag block
            pl.BlockSpec((d_in, d_pad), lambda g: (0, 0)),     # resident W1 (once)
            pl.BlockSpec((1, d_pad), lambda g: (0, 0)),        # resident b1
            pl.BlockSpec((1, d_pad), lambda g: (0, 0)),        # resident w2
        ],
        out_specs=pl.BlockSpec((tb, d_pad), lambda g: (g, 0)),
        out_shape=jax.ShapeDtypeStruct((B, d_pad), jnp.float32),
        compiler_params=pltpu.CompilerParams(
            dimension_semantics=("parallel",),   # megacore split on v7x
            vmem_limit_bytes=vmem_limit,
        ),
        cost_estimate=cost,
    )(bags_flat, w1p, b1p, w2p)

    return out[:, :d_out]


def attention_in_bag(bag, w1, b1, w2, b2=None):
    """Single-bag forward matching the PyTorch module: (N, agg_in) -> (1, agg_out)."""
    return attention_in_bag_batched(bag[None], w1, b1, w2, b2)


def _reference_single(bag, w1, b1, w2, b2):
    h = bag.astype(jnp.float32) @ w1 + jnp.reshape(b1, (1, -1))
    h = jnp.where(h > 0, h, 0.2 * h)
    e = (h @ jnp.reshape(w2, (-1, 1)) + jnp.reshape(b2, ())).reshape(1, -1)
    alpha = jax.nn.softmax(e, axis=1)
    return alpha @ h


if __name__ == "__main__":
    N, AGG_IN, AGG_OUT = 8, 16, 32

    key = jax.random.PRNGKey(0)
    k_bag, k_w1, k_b1, k_w2, k_b2, k_bag2 = jax.random.split(key, 6)

    # Deterministic parameter init (PyTorch Linear-style uniform bounds).
    bound1 = 1.0 / (AGG_IN ** 0.5)
    w1 = jax.random.uniform(k_w1, (AGG_IN, AGG_OUT), jnp.float32, -bound1, bound1)
    b1 = jax.random.uniform(k_b1, (1, AGG_OUT), jnp.float32, -bound1, bound1)
    bound2 = 1.0 / (AGG_OUT ** 0.5)
    w2 = jax.random.uniform(k_w2, (AGG_OUT, 1), jnp.float32, -bound2, bound2)
    b2 = jax.random.uniform(k_b2, (1, 1), jnp.float32, -bound2, bound2)

    # Small batch: single grid step, block == full array (no raggedness).
    B = 20
    bags = jax.random.normal(k_bag, (B, N, AGG_IN), dtype=jnp.float32)
    out = jax.block_until_ready(attention_in_bag_batched(bags, w1, b1, w2, b2))
    assert out.shape == (B, AGG_OUT)
    ref = jax.vmap(lambda bag: _reference_single(bag, w1, b1, w2, b2)[0])(bags)
    assert jnp.allclose(out, ref, atol=2e-3, rtol=2e-3), (out, ref)

    # Larger batch: multi-step grid with a ragged last block (out-of-bounds reads
    # only reach discarded output rows because the computation is per-bag).
    B2 = 300
    bags2 = jax.random.normal(k_bag2, (B2, N, AGG_IN), dtype=jnp.float32)
    out2 = jax.block_until_ready(attention_in_bag_batched(bags2, w1, b1, w2, b2))
    assert out2.shape == (B2, AGG_OUT)
    ref2 = jax.vmap(lambda bag: _reference_single(bag, w1, b1, w2, b2)[0])(bags2)
    assert jnp.allclose(out2, ref2, atol=2e-3, rtol=2e-3), (out2, ref2)
    assert bool(jnp.all(jnp.isfinite(out2)))

    # Single-bag path matching the original module's forward() signature.
    out1 = jax.block_until_ready(attention_in_bag(bags[0], w1, b1, w2, b2))
    assert out1.shape == (1, AGG_OUT)
    ref1 = _reference_single(bags[0], w1, b1, w2, b2)
    assert jnp.allclose(out1, ref1, atol=2e-3, rtol=2e-3), (out1, ref1)

    print("KERNEL_OK")
</pallas_src>

<mosaic_0001>
module attributes {stable_mosaic.version = 11 : i64} {
  func.func @_attention_in_bag_kernel(%arg0: i32, %arg1: memref<160x16xf32, #tpu.memory_space<vmem>>, %arg2: memref<16x128xf32, #tpu.memory_space<vmem>>, %arg3: memref<1x128xf32, #tpu.memory_space<vmem>>, %arg4: memref<1x128xf32, #tpu.memory_space<vmem>>, %arg5: memref<20x128xf32, #tpu.memory_space<vmem>>) attributes {dimension_semantics = [#tpu.dimension_semantics<parallel>], iteration_bounds = array<i64: 1>, scalar_prefetch = 0 : i64, scratch_operands = 0 : i64, tpu.core_type = #tpu.core_type<tc>, window_params = [{transform_indices = @transform_0, window_bounds = array<i64: 160, 16>}, {pipeline_mode = #tpu.pipeline_mode<synchronous>, transform_indices = @transform_1, window_bounds = array<i64: 16, 128>}, {pipeline_mode = #tpu.pipeline_mode<synchronous>, transform_indices = @transform_2, window_bounds = array<i64: 1, 128>}, {pipeline_mode = #tpu.pipeline_mode<synchronous>, transform_indices = @transform_3, window_bounds = array<i64: 1, 128>}, {transform_indices = @transform_4, window_bounds = array<i64: 20, 128>}]} {
    %c0 = arith.constant 0 : index
    %c0_0 = arith.constant 0 : index
    %0 = vector.load %arg1[%c0, %c0_0] : memref<160x16xf32, #tpu.memory_space<vmem>>, vector<160x16xf32>
    %c0_1 = arith.constant 0 : index
    %c0_2 = arith.constant 0 : index
    %1 = vector.load %arg2[%c0_1, %c0_2] : memref<16x128xf32, #tpu.memory_space<vmem>>, vector<16x128xf32>
    %cst = arith.constant dense<0.000000e+00> : vector<160x128xf32>
    %2 = tpu.matmul %0, %1, %cst {dimension_numbers = #tpu.dot_dimension_numbers<[1], [0], [0], [1], [0, 0, 1, 1], [], []>} : vector<160x16xf32>, vector<16x128xf32>, vector<160x128xf32> -> vector<160x128xf32>
    %c0_3 = arith.constant 0 : index
    %c0_4 = arith.constant 0 : index
    %3 = vector.load %arg3[%c0_3, %c0_4] : memref<1x128xf32, #tpu.memory_space<vmem>>, vector<1x128xf32>
    %4 = vector.broadcast %3 : vector<1x128xf32> to vector<160x128xf32>
    %5 = arith.addf %2, %4 : vector<160x128xf32>
    %cst_5 = arith.constant 0.000000e+00 : f32
    %6 = vector.broadcast %cst_5 : f32 to vector<160x128xf32>
    %7 = arith.cmpf ogt, %5, %6 : vector<160x128xf32>
    %cst_6 = arith.constant 2.000000e-01 : f32
    %8 = vector.broadcast %cst_6 : f32 to vector<160x128xf32>
    %9 = arith.mulf %8, %5 : vector<160x128xf32>
    %10 = arith.select %7, %5, %9 : vector<160x128xi1>, vector<160x128xf32>
    %11 = vector.shape_cast %10 : vector<160x128xf32> to vector<20x8x128xf32>
    %c0_7 = arith.constant 0 : index
    %c0_8 = arith.constant 0 : index
    %12 = vector.load %arg4[%c0_7, %c0_8] : memref<1x128xf32, #tpu.memory_space<vmem>>, vector<1x128xf32>
    %13 = vector.shape_cast %12 : vector<1x128xf32> to vector<1x1x128xf32>
    %14 = vector.broadcast %13 : vector<1x1x128xf32> to vector<20x8x128xf32>
    %15 = arith.mulf %11, %14 : vector<20x8x128xf32>
    %cst_9 = arith.constant dense<0.000000e+00> : vector<20x8xf32>
    %16 = vector.multi_reduction <add>, %15, %cst_9 [2] : vector<20x8x128xf32> to vector<20x8xf32>
    %cst_10 = arith.constant dense<0xFF800000> : vector<20xf32>
    %17 = vector.multi_reduction <maximumf>, %16, %cst_10 [1] : vector<20x8xf32> to vector<20xf32>
    %18 = vector.shape_cast %17 : vector<20xf32> to vector<20x1xf32>
    %19 = vector.broadcast %18 : vector<20x1xf32> to vector<20x8xf32>
    %20 = arith.subf %16, %19 : vector<20x8xf32>
    %21 = math.exp %20 : vector<20x8xf32>
    %cst_11 = arith.constant dense<0.000000e+00> : vector<20xf32>
    %22 = vector.multi_reduction <add>, %21, %cst_11 [1] : vector<20x8xf32> to vector<20xf32>
    %23 = vector.shape_cast %22 : vector<20xf32> to vector<20x1xf32>
    %24 = vector.broadcast %23 : vector<20x1xf32> to vector<20x8xf32>
    %25 = arith.divf %21, %24 : vector<20x8xf32>
    %26 = vector.shape_cast %25 : vector<20x8xf32> to vector<20x8x1xf32>
    %27 = vector.broadcast %26 : vector<20x8x1xf32> to vector<20x8x128xf32>
    %28 = arith.mulf %27, %11 : vector<20x8x128xf32>
    %cst_12 = arith.constant dense<0.000000e+00> : vector<20x128xf32>
    %29 = vector.multi_reduction <add>, %28, %cst_12 [1] : vector<20x8x128xf32> to vector<20x128xf32>
    %c0_13 = arith.constant 0 : index
    %c0_14 = arith.constant 0 : index
    %30 = vector.load %arg5[%c0_13, %c0_14] : memref<20x128xf32, #tpu.memory_space<vmem>>, vector<20x128xf32>
    tpu.vector_store %arg5[%c0_13, %c0_14], %29 {strides = array<i32>} : memref<20x128xf32, #tpu.memory_space<vmem>>, vector<20x128xf32>,
    return
  }
  func.func @transform_0(%arg0: i32) -> (i32, i32) {
    %c0_i32 = arith.constant 0 : i32
    %c0_i32_0 = arith.constant 0 : i32
    return %arg0, %c0_i32 : i32, i32
  }
  func.func @transform_1(%arg0: i32) -> (i32, i32) {
    %c0_i32 = arith.constant 0 : i32
    %c0_i32_0 = arith.constant 0 : i32
    %c0_i32_1 = arith.constant 0 : i32
    return %c0_i32, %c0_i32_0 : i32, i32
  }
  func.func @transform_2(%arg0: i32) -> (i32, i32) {
    %c0_i32 = arith.constant 0 : i32
    %c0_i32_0 = arith.constant 0 : i32
    %c0_i32_1 = arith.constant 0 : i32
    return %c0_i32, %c0_i32_0 : i32, i32
  }
  func.func @transform_3(%arg0: i32) -> (i32, i32) {
    %c0_i32 = arith.constant 0 : i32
    %c0_i32_0 = arith.constant 0 : i32
    %c0_i32_1 = arith.constant 0 : i32
    return %c0_i32, %c0_i32_0 : i32, i32
  }
  func.func @transform_4(%arg0: i32) -> (i32, i32) {
    %c0_i32 = arith.constant 0 : i32
    %c0_i32_0 = arith.constant 0 : i32
    return %arg0, %c0_i32 : i32, i32
  }
}

</mosaic_0001>

<bundles_post_ra>
// kernel: tpu_custom_call.1
= control target key start
LH: loop header
LB: loop body
LE: loop exit
PB: predicated region body
PF: predicated region fallthrough
CT: control target
= control target key end

     0   :  { %vm44_vm0 = vcmask 130048   ;;  %s2319_s0 = inlined_call_operand.vmem [shape: f32[160,16], index: 0, kind: input, shape index: {}]   ;;  %s2320_s1 = inlined_call_operand.vmem [shape: f32[16,128], index: 1, kind: input, shape index: {}]   ;;  %s2321_s2 = inlined_call_operand.vmem [shape: f32[1,128], index: 2, kind: input, shape index: {}]   ;;  %s2322_s3 = inlined_call_operand.vmem [shape: f32[1,128], index: 3, kind: input, shape index: {}]   ;;  %s2323_s4 = inlined_call_operand.hbm [shape: f32[20,128], index: 4, kind: output, shape index: {}]  }
   0x1   :  { %v39_v0 = vld [vmem:[%s2320_s1 + $0x8] sm:$0xff]  ;;  %v38_v1 = vld [vmem:[%s2320_s1] sm:$0xff]  ;;  %v28_v4 = vld [vmem:[%s2319_s0 + $0x50] sm:$0xff] }
   0x2   :  { %119 = vmatpush.msra.mxu0 %v39_v0  ;;  %1282 = vmatpush.msra.mxu1 %v39_v0  ;;  %v18_v2 = vld [vmem:[%s2319_s0] sm:$0xff]  ;;  %v23_v3 = vld [vmem:[%s2319_s0 + $0x28] sm:$0xff]  ;;  %v33_v5 = vld [vmem:[%s2319_s0 + $0x78] sm:$0xff] }
   0x3   :  { %1283 = vmatpush.msra.mxu2 %v39_v0  ;;  %1284 = vmatpush.msra.mxu3 %v39_v0 }
   0x4   :  { %120 = vmatpush.msra.mxu0 %v38_v1  ;;  %1285 = vmatpush.msra.mxu1 %v38_v1 }
   0x5   :  { %1286 = vmatpush.msra.mxu2 %v38_v1  ;;  %1262 = vmatmul.msk.f32.vlgmr.msra.gmra.mxu0 %vm44_vm0, %v18_v2 }
   0x6   :  { %1267 = vmatmul.msk.f32.vlgmr.msra.gmra.mxu1 %vm44_vm0, %v23_v3  ;;  %1272 = vmatmul.msk.f32.vlgmr.msra.gmra.mxu2 %vm44_vm0, %v28_v4 }
   0x7   :  { %1287 = vmatpush.msra.mxu3 %v38_v1 }
   0x8   :  { %1277 = vmatmul.msk.f32.vlgmr.msra.gmra.mxu3 %vm44_vm0, %v33_v5 }
   0x9   :  { %9 = vsyncpa [#allocation3], 0  ;;  %v19_v6 = vld [vmem:[%s2319_s0 + $0x8] sm:$0xff]  ;;  %v24_v7 = vld [vmem:[%s2319_s0 + $0x30] sm:$0xff]  ;;  %s1250_s10 = sshll.u32 %s2323_s4, 4  ;;  %s1405_s11 = smov 128   ;;  %s1251_s10 = int_to_ptr.hbm [resolvable:$true] %s1250_s10 }
   0xa   :  { %v29_v8 = vld [vmem:[%s2319_s0 + $0x58] sm:$0xff]  ;;  %v34_v9 = vld [vmem:[%s2319_s0 + $0x80] sm:$0xff]  ;;  %v20_v10 = vld [vmem:[%s2319_s0 + $0x10] sm:$0xff]  ;;  %s1406_s12 = smov 8  }
   0xb   :  { %v25_v11 = vld [vmem:[%s2319_s0 + $0x38] sm:$0xff]  ;;  %v30_v12 = vld [vmem:[%s2319_s0 + $0x60] sm:$0xff]  ;;  %v35_v13 = vld [vmem:[%s2319_s0 + $0x88] sm:$0xff] }
   0xc   :  { %v21_v14 = vld [vmem:[%s2319_s0 + $0x18] sm:$0xff]  ;;  %v26_v15 = vld [vmem:[%s2319_s0 + $0x40] sm:$0xff]  ;;  %v31_v16 = vld [vmem:[%s2319_s0 + $0x68] sm:$0xff] }
   0xd   :  { %1263 = vmatmul.msk.f32.gmra.mxu0 %vm44_vm0, %v19_v6  ;;  %v36_v17 = vld [vmem:[%s2319_s0 + $0x90] sm:$0xff]  ;;  %v22_v18 = vld [vmem:[%s2319_s0 + $0x20] sm:$0xff]  ;;  %v27_v19 = vld [vmem:[%s2319_s0 + $0x48] sm:$0xff] }
   0xe   :  { %1268 = vmatmul.msk.f32.gmra.mxu1 %vm44_vm0, %v24_v7  ;;  %1273 = vmatmul.msk.f32.gmra.mxu2 %vm44_vm0, %v29_v8  ;;  %v32_v20 = vld [vmem:[%s2319_s0 + $0x70] sm:$0xff]  ;;  %v37_v21 = vld [vmem:[%s2319_s0 + $0x98] sm:$0xff]  ;;  %v1521_v22 = vld [vmem:[%s2321_s2] ss:$0 sm:$0xff]  ;;  %s1404_s0 = smov [#allocation2]  }
   0xf   :  { %v1528_v27 = vld [vmem:[%s2322_s3] ss:$0 sm:$0xff]  ;;  %s1248_s2 = sshll.u32 %s1404_s0, 4  ;;  %s1249_s2 = int_to_ptr.vmem [resolvable:$true] %s1248_s2 }
  0x10   :  { %1278 = vmatmul.msk.f32.gmra.mxu3 %vm44_vm0, %v34_v9 }
  0x15   :  { %1264 = vmatmul.msk.f32.gmra.mxu0 %vm44_vm0, %v20_v10 }
  0x16   :  { %1269 = vmatmul.msk.f32.gmra.mxu1 %vm44_vm0, %v25_v11  ;;  %1274 = vmatmul.msk.f32.gmra.mxu2 %vm44_vm0, %v30_v12 }
  0x18   :  { %1279 = vmatmul.msk.f32.gmra.mxu3 %vm44_vm0, %v35_v13 }
  0x1d   :  { %1265 = vmatmul.msk.f32.gmra.mxu0 %vm44_vm0, %v21_v14 }
  0x1e   :  { %1270 = vmatmul.msk.f32.gmra.mxu1 %vm44_vm0, %v26_v15  ;;  %1275 = vmatmul.msk.f32.gmra.mxu2 %vm44_vm0, %v31_v16 }
  0x20   :  { %1280 = vmatmul.msk.f32.gmra.mxu3 %vm44_vm0, %v36_v17 }
  0x25   :  { %1266 = vmatmul.msk.f32.gmra.mxu0 %vm44_vm0, %v22_v18 }
  0x26   :  { %1271 = vmatmul.msk.f32.gmra.mxu1 %vm44_vm0, %v27_v19  ;;  %1276 = vmatmul.msk.f32.gmra.mxu2 %vm44_vm0, %v32_v20 }
  0x28   :  { %1281 = vmatmul.msk.f32.gmra.mxu3 %vm44_vm0, %v37_v21 }
  0x82   :  { %v122_v23 = vpop.f32.mrf.mxu0 }
  0x83   :  { %v123_v24 = vadd.f32 %v1521_v22, %v122_v23  ;;  %v137_v25 = vpop.f32.mrf.mxu1 }
  0x84   :  { %v138_v26 = vadd.f32 %v1521_v22, %v137_v25 }
  0x85   :  { %v202_v28 = vmul.f32 0.2, %v123_v24  ;;  %vm182_vm1 = vcmp.gt.f32.partialorder %v123_v24, 0.0 }
  0x86   :  { %v207_v29 = vmul.f32 0.2, %v138_v26  ;;  %vm187_vm2 = vcmp.gt.f32.partialorder %v138_v26, 0.0 }
  0x87   :  { %v1530_v30 = vsel %vm182_vm1, %v123_v24, %v202_v28 }
  0x88   :  { %2354 = vst [vmem:[#allocation5_spill] sm:$0xff] %v1530_v30  ;;  %v1532_v31 = vsel %vm187_vm2, %v138_v26, %v207_v29  ;;  %v246_v32 = vmul.f32 %v1528_v27, %v1530_v30 }
  0x89   :  { %2355 = vst [vmem:[#allocation6_spill] sm:$0xff] %v1532_v31  ;;  %v152_v33 = vpop.f32.mrf.mxu2  ;;  %v251_v34 = vmul.f32 %v1528_v27, %v1532_v31 }
  0x8a   :  { %v153_v35 = vadd.f32 %v1521_v22, %v152_v33  ;;  %v125_v36 = vpop.f32.mrf.mxu0  ;;  %266 = vadd.xlane.f32.xlu0 %v246_v32 }
  0x8b   :  { %v140_v37 = vpop.f32.mrf.mxu1  ;;  %276 = vadd.xlane.f32.xlu2 %v251_v34  ;;  %v126_v38 = vadd.f32 %v1521_v22, %v125_v36  ;;  %v1540_v39 = vpop.f32.mrf.mxu3 }
  0x8c   :  { %v212_v40 = vmul.f32 0.2, %v153_v35  ;;  %vm192_vm3 = vcmp.gt.f32.partialorder %v153_v35, 0.0  ;;  %v141_v41 = vadd.f32 %v1521_v22, %v140_v37  ;;  %v168_v26 = vadd.f32 %v1521_v22, %v1540_v39 }
  0x8d   :  { %v203_v42 = vmul.f32 0.2, %v126_v38  ;;  %vm183_vm4 = vcmp.gt.f32.partialorder %v126_v38, 0.0 }
  0x8e   :  { %v1543_v43 = vsel %vm192_vm3, %v153_v35, %v212_v40  ;;  %v208_v47 = vmul.f32 0.2, %v141_v41  ;;  %vm188_vm5 = vcmp.gt.f32.partialorder %v141_v41, 0.0  ;;  %v217_v40 = vmul.f32 0.2, %v168_v26 }
  0x8f   :  { %2356 = vst [vmem:[#allocation7_spill] sm:$0xff] %v1543_v43  ;;  %v256_v44 = vmul.f32 %v1528_v27, %v1543_v43  ;;  %v1547_v45 = vsel %vm183_vm4, %v126_v38, %v203_v42  ;;  %vm197_vm0 = vcmp.gt.f32.partialorder %v168_v26, 0.0 }
  0x90   :  { %2357 = vst [vmem:[#allocation8_spill] sm:$0xff] %v1547_v45  ;;  %v247_v46 = vmul.f32 %v1528_v27, %v1547_v45  ;;  %v1556_v57 = vsel %vm188_vm5, %v141_v41, %v208_v47  ;;  %vm348_vm5 = vcmask 1041409  }
  0x91   :  { %286 = vadd.xlane.f32.xlu1 %v256_v44  ;;  %v155_v48 = vpop.f32.mrf.mxu2  ;;  %2358 = vst [vmem:[#allocation9_spill] sm:$0xff] %v1556_v57  ;;  %v252_v62 = vmul.f32 %v1528_v27, %v1556_v57 }
  0x92   :  { %v156_v49 = vadd.f32 %v1521_v22, %v155_v48  ;;  %v128_v50 = vpop.f32.mrf.mxu0  ;;  %268 = vadd.xlane.f32.xlu0 %v247_v46 }
  0x93   :  { %v129_v51 = vadd.f32 %v1521_v22, %v128_v50  ;;  %v143_v52 = vpop.f32.mrf.mxu1  ;;  %v1553_v53 = vpop.f32.mrf.mxu3 }
  0x94   :  { %v213_v54 = vmul.f32 0.2, %v156_v49  ;;  %vm193_vm6 = vcmp.gt.f32.partialorder %v156_v49, 0.0  ;;  %v144_v56 = vadd.f32 %v1521_v22, %v143_v52  ;;  %v171_v47 = vadd.f32 %v1521_v22, %v1553_v53 }
  0x95   :  { %v204_v55 = vmul.f32 0.2, %v129_v51  ;;  %vm184_vm7 = vcmp.gt.f32.partialorder %v129_v51, 0.0 }
  0x96   :  { %v1558_v58 = vsel %vm193_vm6, %v156_v49, %v213_v54  ;;  %v209_v63 = vmul.f32 0.2, %v144_v56  ;;  %vm189_vm8 = vcmp.gt.f32.partialorder %v144_v56, 0.0  ;;  %v1611_v49 = vsel %vm197_vm0, %v168_v26, %v217_v40 }
  0x97   :  { %2359 = vst [vmem:[#allocation10_spill] sm:$0xff] %v1558_v58  ;;  %v257_v59 = vmul.f32 %v1528_v27, %v1558_v58  ;;  %v1562_v60 = vsel %vm184_vm7, %v129_v51, %v204_v55  ;;  %v218_v55 = vmul.f32 0.2, %v171_v47  ;;  %vm198_vm3 = vcmp.gt.f32.partialorder %v171_v47, 0.0 }
  0x98   :  { %2360 = vst [vmem:[#allocation11_spill] sm:$0xff] %v1562_v60  ;;  %v248_v61 = vmul.f32 %v1528_v27, %v1562_v60  ;;  %v1571_v8 = vsel %vm189_vm8, %v144_v56, %v209_v63  ;;  %v261_v56 = vmul.f32 %v1528_v27, %v1611_v49  ;;  %vm350_vm6 = vcmask 1042434  }
  0x99   :  { %288 = vadd.xlane.f32.xlu2 %v257_v59  ;;  %v158_v0 = vpop.f32.mrf.mxu2  ;;  %2361 = vst [vmem:[#allocation12_spill] sm:$0xff] %v1571_v8  ;;  %v253_v13 = vmul.f32 %v1528_v27, %v1571_v8  ;;  %vm2353_vm7 = vcmask 1043459   ;;  %vm2352_vm8 = vcmask 1044484  }
  0x9a   :  { %v131_v1 = vpop.f32.mrf.mxu0  ;;  %v159_v2 = vadd.f32 %v1521_v22, %v158_v0  ;;  %270 = vadd.xlane.f32.xlu1 %v248_v61  ;;  %278 = vadd.xlane.f32.xlu0 %v252_v62  ;;  %2369 = vst [vmem:[#allocation20_spill] sm:$0xff] %v1611_v49  ;;  %v1622_v62 = vsel %vm198_vm3, %v171_v47, %v218_v55 }
  0x9b   :  { %v146_v3 = vpop.f32.mrf.mxu1  ;;  %v173_v6 = vpop.f32.mrf.mxu3  ;;  %v132_v7 = vadd.f32 %v1521_v22, %v131_v1  ;;  %2372 = vst [vmem:[#allocation23_spill] sm:$0xff] %v1622_v62 }
  0x9c   :  { %v147_v4 = vadd.f32 %v1521_v22, %v146_v3  ;;  %v214_v5 = vmul.f32 0.2, %v159_v2  ;;  %vm194_vm9 = vcmp.gt.f32.partialorder %v159_v2, 0.0  ;;  %v174_v21 = vadd.f32 %v1521_v22, %v173_v6 }
  0x9d   :  { %v205_v14 = vmul.f32 0.2, %v132_v7  ;;  %vm185_vm11 = vcmp.gt.f32.partialorder %v132_v7, 0.0 }
  0x9e   :  { %v210_v9 = vmul.f32 0.2, %v147_v4  ;;  %vm190_vm10 = vcmp.gt.f32.partialorder %v147_v4, 0.0  ;;  %v1573_v10 = vsel %vm194_vm9, %v159_v2, %v214_v5  ;;  %v219_v33 = vmul.f32 0.2, %v174_v21 }
  0x9f   :  { %2362 = vst [vmem:[#allocation13_spill] sm:$0xff] %v1573_v10  ;;  %v258_v11 = vmul.f32 %v1528_v27, %v1573_v10  ;;  %v1587_v25 = vsel %vm185_vm11, %v132_v7, %v205_v14  ;;  %vm199_vm15 = vcmp.gt.f32.partialorder %v174_v21, 0.0  ;;  %v262_v2 = vmul.f32 %v1528_v27, %v1622_v62 }
  0xa0   :  { %v1577_v12 = vsel %vm190_vm10, %v147_v4, %v210_v9  ;;  %2364 = vst [vmem:[#allocation15_spill] sm:$0xff] %v1587_v25  ;;  %v249_v36 = vmul.f32 %v1528_v27, %v1587_v25  ;;  %v1605_v46 = vsel %vm199_vm15, %v174_v21, %v219_v33  ;;  %v326_v14 = vlaneseq }
  0xa1   :  { %2363 = vst [vmem:[#allocation14_spill] sm:$0xff] %v1577_v12  ;;  %v254_v15 = vmul.f32 %v1528_v27, %v1577_v12  ;;  %v161_v16 = vpop.f32.mrf.mxu2  ;;  %v263_v50 = vmul.f32 %v1528_v27, %v1605_v46  ;;  %vm2351_vm9 = vcmask 1045509   ;;  %vm2350_vm10 = vcmask 1046534  }
  0xa2   :  { %v134_v17 = vpop.f32.mrf.mxu0  ;;  %280 = vadd.xlane.f32.xlu1 %v253_v13  ;;  %290 = vadd.xlane.f32.xlu0 %v258_v11  ;;  %v162_v20 = vadd.f32 %v1521_v22, %v161_v16  ;;  %2368 = vst [vmem:[#allocation19_spill] sm:$0xff] %v1605_v46  ;;  %vm2349_vm11 = vcmask 1047559  }
  0xa3   :  { %v149_v18 = vpop.f32.mrf.mxu1  ;;  %282 = vadd.xlane.f32.xlu2 %v254_v15  ;;  %v135_v19 = vadd.f32 %v1521_v22, %v134_v17  ;;  %v176_v29 = vpop.f32.mrf.mxu3  ;;  %v1654_v17 = vand.u32 127, %v326_v14 }
  0xa4   :  { %v150_v23 = vadd.f32 %v1521_v22, %v149_v18  ;;  %v215_v32 = vmul.f32 0.2, %v162_v20  ;;  %vm195_vm14 = vcmp.gt.f32.partialorder %v162_v20, 0.0  ;;  %v177_v44 = vadd.f32 %v1521_v22, %v176_v29 }
  0xa5   :  { %v206_v24 = vmul.f32 0.2, %v135_v19  ;;  %vm186_vm12 = vcmp.gt.f32.partialorder %v135_v19, 0.0 }
  0xa6   :  { %v211_v28 = vmul.f32 0.2, %v150_v23  ;;  %vm191_vm13 = vcmp.gt.f32.partialorder %v150_v23, 0.0  ;;  %v1601_v41 = vsel %vm195_vm14, %v162_v20, %v215_v32  ;;  %v220_v52 = vmul.f32 0.2, %v177_v44 }
  0xa7   :  { %v1591_v34 = vsel %vm186_vm12, %v135_v19, %v206_v24  ;;  %2367 = vst [vmem:[#allocation18_spill] sm:$0xff] %v1601_v41  ;;  %v259_v48 = vmul.f32 %v1528_v27, %v1601_v41  ;;  %vm200_vm2 = vcmp.gt.f32.partialorder %v177_v44, 0.0  ;;  %vm375_vm12 = vcmask 64512  }
  0xa8   :  { %2365 = vst [vmem:[#allocation16_spill] sm:$0xff] %v1591_v34  ;;  %v250_v35 = vmul.f32 %v1528_v27, %v1591_v34  ;;  %v1597_v37 = vsel %vm191_vm13, %v150_v23, %v211_v28  ;;  %v1620_v61 = vsel %vm200_vm2, %v177_v44, %v220_v52  ;;  %vm382_vm13 = vcmask 60416  }
  0xa9   :  { %2366 = vst [vmem:[#allocation17_spill] sm:$0xff] %v1597_v37  ;;  %v255_v38 = vmul.f32 %v1528_v27, %v1597_v37  ;;  %v164_v39 = vpop.f32.mrf.mxu2  ;;  %v264_v1 = vmul.f32 %v1528_v27, %v1620_v61 }
  0xaa   :  { %272 = vadd.xlane.f32.xlu1 %v249_v36  ;;  %v165_v42 = vadd.f32 %v1521_v22, %v164_v39  ;;  %2371 = vst [vmem:[#allocation22_spill] sm:$0xff] %v1620_v61 }
  0xab   :  { %274 = vadd.xlane.f32.xlu2 %v250_v35  ;;  %284 = vadd.xlane.f32.xlu0 %v255_v38  ;;  %v179_v54 = vpop.f32.mrf.mxu3 }
  0xac   :  { %v216_v51 = vmul.f32 0.2, %v165_v42  ;;  %vm196_vm1 = vcmp.gt.f32.partialorder %v165_v42, 0.0  ;;  %v180_v53 = vadd.f32 %v1521_v22, %v179_v54 }
  0xae   :  { %v1618_v59 = vsel %vm196_vm1, %v165_v42, %v216_v51  ;;  %v221_v63 = vmul.f32 0.2, %v180_v53  ;;  %vm201_vm4 = vcmp.gt.f32.partialorder %v180_v53, 0.0 }
  0xaf   :  { %2370 = vst [vmem:[#allocation21_spill] sm:$0xff] %v1618_v59  ;;  %v260_v0 = vmul.f32 %v1528_v27, %v1618_v59 }
  0xb0   :  { %v1630_v22 = vsel %vm201_vm4, %v180_v53, %v221_v63 }
  0xb1   :  { %2373 = vst [vmem:[#allocation24_spill] sm:$0xff] %v1630_v22  ;;  %v265_v3 = vmul.f32 %v1528_v27, %v1630_v22 }
  0xb2   :  { %292 = vadd.xlane.f32.xlu1 %v259_v48 }
  0xb3   :  { %300 = vadd.xlane.f32.xlu2 %v263_v50  ;;  %296 = vadd.xlane.f32.xlu0 %v261_v56 }
  0xba   :  { %298 = vadd.xlane.f32.xlu1 %v262_v2 }
  0xbb   :  { %294 = vadd.xlane.f32.xlu2 %v260_v0  ;;  %302 = vadd.xlane.f32.xlu0 %v264_v1 }
  0xc2   :  { %304 = vadd.xlane.f32.xlu1 %v265_v3 }
  0xfd   :  { %v1634_v4 = vpop.xlane.xlu0 %266 }
  0xfe   :  { %v1636_v5 = vpop.xlane.xlu2 %276  ;;  %v328_v20 = vperm.slane %v1634_v4, %v1654_v17 }
  0xff   :  { %v333_v33 = vperm.slane %v1636_v5, %v1654_v17 }
 0x104   :  { %v1638_v6 = vpop.xlane.xlu1 %286 }
 0x105   :  { %v1640_v7 = vpop.xlane.xlu0 %268  ;;  %v338_v56 = vperm.slane %v1638_v6, %v1654_v17 }
 0x106   :  { %v329_v18 = vperm.slane %v1640_v7, %v1654_v17 }
 0x108   :  { %v349_v23 = vsel %vm348_vm5, %v329_v18, %v328_v20 }
 0x10c   :  { %v1642_v9 = vpop.xlane.xlu2 %288 }
 0x10d   :  { %v1644_v11 = vpop.xlane.xlu1 %270  ;;  %v1646_v13 = vpop.xlane.xlu0 %278  ;;  %v339_v63 = vperm.slane %v1642_v9, %v1654_v17 }
 0x10e   :  { %v330_v19 = vperm.slane %v1644_v11, %v1654_v17  ;;  %v334_v36 = vperm.slane %v1646_v13, %v1654_v17 }
 0x110   :  { %v351_v29 = vsel %vm350_vm6, %v330_v19, %v349_v23 }
 0x115   :  { %v1648_v15 = vpop.xlane.xlu1 %280  ;;  %v1650_v16 = vpop.xlane.xlu0 %290 }
 0x116   :  { %v1652_v27 = vpop.xlane.xlu2 %282  ;;  %v335_v39 = vperm.slane %v1648_v15, %v1654_v17  ;;  %v340_v2 = vperm.slane %v1650_v16, %v1654_v17 }
 0x117   :  { %v336_v47 = vperm.slane %v1652_v27, %v1654_v17 }
 0x11d   :  { %v1662_v21 = vpop.xlane.xlu1 %272 }
 0x11e   :  { %v1665_v24 = vpop.xlane.xlu2 %274  ;;  %v331_v26 = vperm.slane %v1662_v21, %v1654_v17  ;;  %v1669_v28 = vpop.xlane.xlu0 %284 }
 0x11f   :  { %v332_v32 = vperm.slane %v1665_v24, %v1654_v17  ;;  %v337_v40 = vperm.slane %v1669_v28, %v1654_v17 }
 0x120   :  { %v353_v35 = vsel %vm2353_vm7, %v331_v26, %v351_v29 }
 0x121   :  { %v355_v38 = vsel %vm2352_vm8, %v332_v32, %v353_v35  ;;  %v362_v52 = vsel %vm348_vm5, %v337_v40, %v336_v47 }
 0x122   :  { %v357_v42 = vsel %vm2351_vm9, %v333_v33, %v355_v38  ;;  %v363_v53 = vsel %vm350_vm6, %v338_v56, %v362_v52 }
 0x123   :  { %v359_v44 = vsel %vm2350_vm10, %v334_v36, %v357_v42  ;;  %v364_v1 = vsel %vm2353_vm7, %v339_v63, %v363_v53 }
 0x124   :  { %v361_v48 = vsel %vm2349_vm11, %v335_v39, %v359_v44  ;;  %v365_v19 = vsel %vm2352_vm8, %v340_v2, %v364_v1 }
 0x125   :  { %v1689_v50 = vpop.xlane.xlu1 %292  ;;  %v376_v51 = vsel %vm375_vm12, %v361_v48, -inf }
 0x126   :  { %v1693_v54 = vpop.xlane.xlu2 %300  ;;  %v1695_v55 = vpop.xlane.xlu0 %296  ;;  %377 = vmax.xlane.f32.xlu2 %v376_v51  ;;  %v341_v0 = vperm.slane %v1689_v50, %v1654_v17  ;;  %v1403_v51 = vmov 0  }
 0x127   :  { %v343_v20 = vperm.slane %v1695_v55, %v1654_v17  ;;  %v345_v33 = vperm.slane %v1693_v54, %v1654_v17  ;;  %1294 = vset.pattern.permute.xlu1 %v1403_v51  ;;  %1293 = vset.pattern.permute.xlu0 %v1403_v51 }
 0x128   :  { %v366_v29 = vsel %vm2351_vm9, %v341_v0, %v365_v19  ;;  %1292 = vset.pattern.permute.xlu2 %v1403_v51 }
 0x12d   :  { %v1707_v3 = vpop.xlane.xlu1 %298 }
 0x12e   :  { %v1709_v14 = vpop.xlane.xlu2 %294  ;;  %v344_v23 = vperm.slane %v1707_v3, %v1654_v17  ;;  %v1718_v26 = vpop.xlane.xlu0 %302 }
 0x12f   :  { %v342_v18 = vperm.slane %v1709_v14, %v1654_v17  ;;  %v346_v36 = vperm.slane %v1718_v26, %v1654_v17 }
 0x130   :  { %v369_v39 = vsel %vm348_vm5, %v345_v33, %v344_v23 }
 0x131   :  { %v367_v32 = vsel %vm2350_vm10, %v342_v18, %v366_v29  ;;  %v370_v44 = vsel %vm350_vm6, %v346_v36, %v369_v39 }
 0x132   :  { %v368_v35 = vsel %vm2349_vm11, %v343_v20, %v367_v32 }
 0x133   :  { %v379_v38 = vsel %vm375_vm12, %v368_v35, -inf }
 0x134   :  { %380 = vmax.xlane.f32.xlu0 %v379_v38 }
 0x135   :  { %v1729_v40 = vpop.xlane.xlu1 %304 }
 0x136   :  { %v347_v42 = vperm.slane %v1729_v40, %v1654_v17 }
 0x138   :  { %v371_v47 = vsel %vm2353_vm7, %v347_v42, %v370_v44 }
 0x139   :  { %v383_v48 = vsel %vm382_vm13, %v371_v47, -inf }
 0x13a   :  { %384 = vmax.xlane.f32.xlu1 %v383_v48 }
 0x199   :  { %v378_v52 = vpop.xlane.xlu2 %377 }
 0x19a   :  { %v389_v56 = vperm.slane %v378_v52, 0  ;;  %v390_v53 = vperm.slane %v378_v52, 1  ;;  %v391_v63 = vperm.slane %v378_v52, 2  ;;  %v392_v18 = vperm.slane %v378_v52, 3 }
 0x19b   :  { %v394_v19 = vperm.slane %v378_v52, 5  ;;  %v393_v36 = vperm.slane %v378_v52, 4 }
 0x19c   :  { %v429_v0 = vsub.f32 %v1634_v4, %v389_v56  ;;  %v430_v1 = vsub.f32 %v1640_v7, %v390_v53  ;;  %v431_v2 = vsub.f32 %v1644_v11, %v391_v63  ;;  %v432_v32 = vsub.f32 %v1662_v21, %v392_v18 }
 0x19d   :  { %v434_v33 = vsub.f32 %v1636_v5, %v394_v19  ;;  %v396_v7 = vperm.slane %v378_v52, 7  ;;  %v433_v5 = vsub.f32 %v1665_v24, %v393_v36  ;;  %v395_v53 = vperm.slane %v378_v52, 6 }
 0x19e   :  { %v449_v20 = vmul.f32 1.442695, %v429_v0  ;;  %v451_v23 = vmul.f32 1.442695, %v430_v1  ;;  %v453_v29 = vmul.f32 1.442695, %v431_v2 }
 0x19f   :  { %v455_v35 = vmul.f32 1.442695, %v432_v32  ;;  %v459_v4 = vmul.f32 1.442695, %v434_v33  ;;  %v436_v47 = vsub.f32 %v1648_v15, %v396_v7  ;;  %v457_v56 = vmul.f32 1.442695, %v433_v5 }
 0x1a0   :  { %1297 = vpow2.f32 %v449_v20  ;;  %v435_v15 = vsub.f32 %v1646_v13, %v395_v53 }
 0x1a1   :  { %1299 = vpow2.f32 %v451_v23  ;;  %v463_v2 = vmul.f32 1.442695, %v436_v47 }
 0x1a2   :  { %1301 = vpow2.f32 %v453_v29  ;;  %v461_v20 = vmul.f32 1.442695, %v435_v15 }
 0x1a3   :  { %1303 = vpow2.f32 %v455_v35 }
 0x1a4   :  { %1305 = vpow2.f32 %v459_v4 }
 0x1a6   :  { %v1741_v38 = vpop.eup %1297 }
 0x1a7   :  { %v1743_v39 = vpop.eup %1299  ;;  %v1745_v11 = vpop.xlane.xlu0 %380  ;;  %510 = vperm.xlu2 %1292, %v1741_v38  }
 0x1a8   :  { %v1748_v42 = vpop.eup %1301  ;;  %513 = vperm.xlu0 %1293, %v1743_v39   ;;  %v397_v21 = vperm.slane %v1745_v11, 0  ;;  %v400_v48 = vperm.slane %v1745_v11, 3  ;;  %v403_v19 = vperm.slane %v1745_v11, 6  ;;  %v398_v23 = vperm.slane %v1745_v11, 1 }
 0x1a9   :  { %516 = vperm.xlu1 %1294, %v1748_v42   ;;  %v1759_v0 = vpop.eup %1303  ;;  %v399_v13 = vperm.slane %v1745_v11, 2  ;;  %v401_v5 = vperm.slane %v1745_v11, 4 }
 0x1aa   :  { %v437_v44 = vsub.f32 %v1652_v27, %v397_v21  ;;  %v440_v24 = vsub.f32 %v1642_v9, %v400_v48  ;;  %v1764_v27 = vpop.eup %1305  ;;  %v438_v35 = vsub.f32 %v1669_v28, %v398_v23  ;;  %v402_v28 = vperm.slane %v1745_v11, 5 }
 0x1ab   :  { %v439_v36 = vsub.f32 %v1638_v6, %v399_v13 }
 0x1ac   :  { %v465_v51 = vmul.f32 1.442695, %v437_v44  ;;  %v471_v18 = vmul.f32 1.442695, %v440_v24  ;;  %v467_v21 = vmul.f32 1.442695, %v438_v35 }
 0x1ad   :  { %v1757_v63 = vpop.xlane.xlu1 %384 }
 0x1ae   :  { %v405_v1 = vperm.slane %v1757_v63, 0  ;;  %1307 = vpow2.f32 %v465_v51  ;;  %v406_v4 = vperm.slane %v1757_v63, 1  ;;  %v441_v51 = vsub.f32 %v1650_v16, %v401_v5 }
 0x1af   :  { %519 = vperm.xlu2 %1292, %v1759_v0   ;;  %1309 = vpow2.f32 %v457_v56  ;;  %v442_v56 = vsub.f32 %v1689_v50, %v402_v28  ;;  %v408_v15 = vperm.slane %v1757_v63, 3 }
 0x1b0   :  { %v445_v52 = vsub.f32 %v1707_v3, %v405_v1  ;;  %1311 = vpow2.f32 %v463_v2  ;;  %v443_v3 = vsub.f32 %v1709_v14, %v403_v19  ;;  %v469_v14 = vmul.f32 1.442695, %v439_v36 }
 0x1b1   :  { %525 = vperm.xlu1 %1294, %v1764_v27   ;;  %1313 = vpow2.f32 %v471_v18  ;;  %v446_v48 = vsub.f32 %v1693_v54, %v406_v4  ;;  %v407_v1 = vperm.slane %v1757_v63, 2  ;;  %v473_v2 = vmul.f32 1.442695, %v441_v51 }
 0x1b2   :  { %v481_v9 = vmul.f32 1.442695, %v445_v52  ;;  %1315 = vpow2.f32 %v461_v20  ;;  %v477_v7 = vmul.f32 1.442695, %v443_v3  ;;  %v475_v52 = vmul.f32 1.442695, %v442_v56 }
 0x1b3   :  { %v483_v53 = vmul.f32 1.442695, %v446_v48  ;;  %v447_v50 = vsub.f32 %v1718_v26, %v407_v1  ;;  %v448_v18 = vsub.f32 %v1729_v40, %v408_v15  ;;  %v404_v20 = vperm.slane %v1745_v11, 7 }
 0x1b4   :  { %v1771_v29 = vpop.eup %1307  ;;  %1317 = vpow2.f32 %v481_v9 }
 0x1b5   :  { %v1773_v32 = vpop.eup %1309  ;;  %534 = vperm.xlu0 %1293, %v1771_v29   ;;  %1319 = vpow2.f32 %v477_v7  ;;  %v485_v19 = vmul.f32 1.442695, %v447_v50  ;;  %v487_v9 = vmul.f32 1.442695, %v448_v18  ;;  %v444_v26 = vsub.f32 %v1695_v55, %v404_v20 }
 0x1b6   :  { %v1779_v33 = vpop.eup %1311  ;;  %1321 = vpow2.f32 %v467_v21 }
 0x1b7   :  { %522 = vperm.xlu2 %1292, %v1773_v32   ;;  %v1786_v44 = vpop.eup %1313  ;;  %1323 = vpow2.f32 %v469_v14  ;;  %v479_v40 = vmul.f32 1.442695, %v444_v26 }
 0x1b8   :  { %2374 = vst [vmem:[#allocation25_spill] sm:$0xff] %v1786_v44  ;;  %v1788_v47 = vpop.eup %1315  ;;  %1325 = vpow2.f32 %v483_v53 }
 0x1b9   :  { %531 = vperm.xlu1 %1294, %v1779_v33   ;;  %1327 = vpow2.f32 %v473_v2 }
 0x1ba   :  { %v1794_v6 = vpop.eup %1317  ;;  %1329 = vpow2.f32 %v475_v52 }
 0x1bb   :  { %v1800_v24 = vpop.eup %1319  ;;  %1331 = vpow2.f32 %v485_v19 }
 0x1bc   :  { %v1802_v54 = vpop.eup %1321  ;;  %1333 = vpow2.f32 %v487_v9 }
 0x1bd   :  { %543 = vperm.xlu0 %1293, %v1786_v44   ;;  %2375 = vst [vmem:[#allocation26_spill] sm:$0xff] %v1802_v54  ;;  %v1807_v16 = vpop.eup %1323  ;;  %1335 = vpow2.f32 %v479_v40 }
 0x1be   :  { %v1813_v63 = vpop.eup %1325 }
 0x1bf   :  { %528 = vperm.xlu2 %1292, %v1788_v47   ;;  %v1815_v23 = vpop.eup %1327 }
 0x1c0   :  { %2376 = vst [vmem:[#allocation27_spill] sm:$0xff] %v1815_v23  ;;  %v1819_v13 = vpop.eup %1329 }
 0x1c1   :  { %558 = vperm.xlu1 %1294, %v1794_v6   ;;  %v1823_v3 = vpop.eup %1331 }
 0x1c2   :  { %2377 = vst [vmem:[#allocation28_spill] sm:$0xff] %v1823_v3  ;;  %v1826_v11 = vpop.eup %1333 }
 0x1c3   :  { %v1829_v35 = vpop.eup %1335 }
 0x1c4   :  { %2378 = vst [vmem:[#allocation29_spill] sm:$0xff] %v1829_v35 }
 0x1c5   :  { %552 = vperm.xlu0 %1293, %v1800_v24  }
 0x1c7   :  { %537 = vperm.xlu2 %1292, %v1802_v54  }
 0x1c9   :  { %540 = vperm.xlu1 %1294, %v1807_v16  }
 0x1cd   :  { %561 = vperm.xlu0 %1293, %v1813_v63  }
 0x1cf   :  { %546 = vperm.xlu2 %1292, %v1815_v23  }
 0x1d1   :  { %549 = vperm.xlu1 %1294, %v1819_v13  }
 0x1d7   :  { %564 = vperm.xlu2 %1292, %v1823_v3  }
 0x1d9   :  { %567 = vperm.xlu1 %1294, %v1826_v11  }
 0x1df   :  { %555 = vperm.xlu2 %1292, %v1829_v35  }
 0x201   :  { %v511_v36 = vpop.permute.xlu2 %510 }
 0x202   :  { %v569_v28 = vperm.slane %v511_v36, %v1654_v17 }
 0x209   :  { %v520_v4 = vpop.permute.xlu2 %519 }
 0x20a   :  { %v572_v1 = vperm.slane %v520_v4, %v1654_v17 }
 0x211   :  { %v523_v55 = vpop.permute.xlu2 %522 }
 0x212   :  { %v573_v50 = vperm.slane %v523_v55, %v1654_v17 }
 0x219   :  { %v529_v7 = vpop.permute.xlu2 %528 }
 0x21a   :  { %v514_v21 = vpop.permute.xlu0 %513  ;;  %v575_v9 = vperm.slane %v529_v7, %v1654_v17 }
 0x21b   :  { %v517_v5 = vpop.permute.xlu1 %516  ;;  %v570_v14 = vperm.slane %v514_v21, %v1654_v17 }
 0x21c   :  { %v571_v48 = vperm.slane %v517_v5, %v1654_v17 }
 0x21d   :  { %v589_v51 = vsel %vm348_vm5, %v570_v14, %v569_v28 }
 0x21e   :  { %v590_v56 = vsel %vm350_vm6, %v571_v48, %v589_v51 }
 0x21f   :  { %v591_v52 = vsel %vm2353_vm7, %v572_v1, %v590_v56 }
 0x220   :  { %v592_v19 = vsel %vm2352_vm8, %v573_v50, %v591_v52 }
 0x221   :  { %v538_v2 = vpop.permute.xlu2 %537 }
 0x222   :  { %v578_v7 = vperm.slane %v538_v2, %v1654_v17 }
 0x223   :  { %v526_v53 = vpop.permute.xlu1 %525 }
 0x224   :  { %v574_v15 = vperm.slane %v526_v53, %v1654_v17 }
 0x226   :  { %v593_v20 = vsel %vm2351_vm9, %v574_v15, %v592_v19 }
 0x227   :  { %v535_v18 = vpop.permute.xlu0 %534  ;;  %v594_v36 = vsel %vm2350_vm10, %v575_v9, %v593_v20 }
 0x228   :  { %v577_v51 = vperm.slane %v535_v18, %v1654_v17 }
 0x229   :  { %v547_v4 = vpop.permute.xlu2 %546 }
 0x22a   :  { %v596_v1 = vsel %vm348_vm5, %v578_v7, %v577_v51  ;;  %v581_v20 = vperm.slane %v547_v4, %v1654_v17 }
 0x22b   :  { %v532_v26 = vpop.permute.xlu1 %531 }
 0x22c   :  { %v576_v40 = vperm.slane %v532_v26, %v1654_v17 }
 0x22e   :  { %v595_v21 = vsel %vm2349_vm11, %v576_v40, %v594_v36 }
 0x22f   :  { %v609_v5 = vsel %vm375_vm12, %v595_v21, 0.0  ;;  %v544_v14 = vpop.permute.xlu0 %543 }
 0x230   :  { %610 = vadd.xlane.f32.xlu0 %v609_v5  ;;  %v580_v52 = vperm.slane %v544_v14, %v1654_v17 }
 0x231   :  { %v565_v28 = vpop.permute.xlu2 %564 }
 0x233   :  { %v559_v55 = vpop.permute.xlu1 %558 }
 0x234   :  { %v585_v51 = vperm.slane %v559_v55, %v1654_v17 }
 0x237   :  { %v553_v48 = vpop.permute.xlu0 %552 }
 0x238   :  { %v583_v40 = vperm.slane %v553_v48, %v1654_v17  ;;  %v587_v48 = vperm.slane %v565_v28, %v1654_v17 }
 0x239   :  { %v556_v19 = vpop.permute.xlu2 %555 }
 0x23a   :  { %v584_v36 = vperm.slane %v556_v19, %v1654_v17 }
 0x23b   :  { %v541_v56 = vpop.permute.xlu1 %540 }
 0x23c   :  { %v579_v53 = vperm.slane %v541_v56, %v1654_v17 }
 0x23e   :  { %v597_v15 = vsel %vm350_vm6, %v579_v53, %v596_v1 }
 0x23f   :  { %v598_v50 = vsel %vm2353_vm7, %v580_v52, %v597_v15  ;;  %v562_v9 = vpop.permute.xlu0 %561 }
 0x240   :  { %v599_v2 = vsel %vm2352_vm8, %v581_v20, %v598_v50  ;;  %v586_v21 = vperm.slane %v562_v9, %v1654_v17 }
 0x242   :  { %v603_v7 = vsel %vm348_vm5, %v586_v21, %v585_v51 }
 0x243   :  { %v550_v26 = vpop.permute.xlu1 %549  ;;  %v604_v15 = vsel %vm350_vm6, %v587_v48, %v603_v7 }
 0x244   :  { %v582_v18 = vperm.slane %v550_v26, %v1654_v17 }
 0x246   :  { %v600_v5 = vsel %vm2351_vm9, %v582_v18, %v599_v2 }
 0x247   :  { %v601_v14 = vsel %vm2350_vm10, %v583_v40, %v600_v5 }
 0x248   :  { %v602_v4 = vsel %vm2349_vm11, %v584_v36, %v601_v14 }
 0x249   :  { %v612_v56 = vsel %vm375_vm12, %v602_v4, 0.0 }
 0x24a   :  { %613 = vadd.xlane.f32.xlu2 %v612_v56 }
 0x24b   :  { %v568_v53 = vpop.permute.xlu1 %567 }
 0x24c   :  { %v588_v1 = vperm.slane %v568_v53, %v1654_v17 }
 0x24e   :  { %v605_v52 = vsel %vm2353_vm7, %v588_v1, %v604_v15 }
 0x24f   :  { %v615_v50 = vsel %vm382_vm13, %v605_v52, 0.0 }
 0x250   :  { %616 = vadd.xlane.f32.xlu1 %v615_v50 }
 0x2a3   :  { %v1872_v55 = vpop.xlane.xlu0 %610 }
 0x2a4   :  { %v621_v19 = vperm.slane %v1872_v55, 0  ;;  %v625_v20 = vperm.slane %v1872_v55, 4  ;;  %v1877_v9 = vperm.slane %v1872_v55, 7  ;;  %v1880_v28 = vperm.slane %v1872_v55, 1 }
 0x2a5   :  { %v1883_v26 = vperm.slane %v1872_v55, 2  ;;  %v1893_v48 = vperm.slane %v1872_v55, 5 }
 0x2a6   :  { %1337 = vrcp.f32 %v621_v19  ;;  %v670_v36 = vand.u32 2147483647, %v621_v19  ;;  %v672_v21 = vand.u32 2147483648, %v621_v19  ;;  %vm666_vm15 = vweird.f32 %v621_v19 }
 0x2a7   :  { %1339 = vrcp.f32 %v625_v20  ;;  %vm726_vm3 = vweird.f32 %v625_v20  ;;  %v730_v49 = vand.u32 2147483647, %v625_v20  ;;  %vm741_vm10 = vweird.f32 %v1893_v48 }
 0x2a8   :  { %1341 = vrcp.f32 %v1877_v9  ;;  %v673_v53 = vor.u32 1.1754944e-38, %v672_v21  ;;  %vm671_vm1 = vcmp.eq.f32.partialorder %v670_v36, 8.507059e+37 }
 0x2a9   :  { %1343 = vrcp.f32 %v1880_v28  ;;  %vm731_vm12 = vcmp.eq.f32.partialorder %v730_v49, 8.507059e+37 }
 0x2aa   :  { %1345 = vrcp.f32 %v1883_v26 }
 0x2ab   :  { %1347 = vrcp.f32 %v1893_v48 }
 0x2ac   :  { %v1338_v17 = vpop.eup %1337 }
 0x2ad   :  { %v662_v18 = vmul.f32 %v1338_v17, %v621_v19  ;;  %v1340_v2 = vpop.eup %1339  ;;  %vm667_vm14 = vweird.f32 %v1338_v17 }
 0x2ae   :  { %v722_v14 = vmul.f32 %v1340_v2, %v625_v20  ;;  %v1888_v51 = vpop.eup %1341  ;;  %vm668_vm0 = vmor %vm666_vm15, %vm667_vm14  ;;  %vm727_vm2 = vweird.f32 %v1340_v2  ;;  %vm771_vm14 = vweird.f32 %v1877_v9 }
 0x2af   :  { %v663_v40 = vsub.f32 1.0, %v662_v18  ;;  %v1890_v7 = vpop.eup %1343  ;;  %v767_v1 = vmul.f32 %v1888_v51, %v1877_v9  ;;  %v732_v18 = vand.u32 2147483648, %v625_v20  ;;  %vm728_vm4 = vmor %vm726_vm3, %vm727_vm2  ;;  %vm772_vm13 = vweird.f32 %v1888_v51 }
 0x2b0   :  { %v723_v56 = vsub.f32 1.0, %v722_v14  ;;  %v1897_v19 = vpop.eup %1345  ;;  %v677_v21 = vmul.f32 %v1890_v7, %v1880_v28  ;;  %vm1927_vm15 = vmor %vm771_vm14, %vm772_vm13  ;;  %vm681_vm2 = vweird.f32 %v1880_v28  ;;  %vm682_vm3 = vweird.f32 %v1890_v7 }
 0x2b1   :  { %v664_v5 = vmul.f32 %v1338_v17, %v663_v40  ;;  %v768_v40 = vsub.f32 1.0, %v767_v1  ;;  %vm1975_vm13 = vmor %vm681_vm2, %vm682_vm3 }
 0x2b2   :  { %v724_v52 = vmul.f32 %v1340_v2, %v723_v56  ;;  %v733_v56 = vor.u32 1.1754944e-38, %v732_v18  ;;  %v1918_v18 = vpop.eup %1347 }
 0x2b3   :  { %v665_v4 = vadd.f32 %v1338_v17, %v664_v5  ;;  %v769_v36 = vmul.f32 %v1888_v51, %v768_v40  ;;  %v775_v40 = vand.u32 2147483647, %v1877_v9  ;;  %vm742_vm11 = vweird.f32 %v1918_v18 }
 0x2b4   :  { %v725_v14 = vadd.f32 %v1340_v2, %v724_v52 }
 0x2b5   :  { %v669_v15 = vsel %vm668_vm0, %v1338_v17, %v665_v4  ;;  %v1905_v4 = vperm.slane %v1872_v55, 3  ;;  %vm696_vm0 = vweird.f32 %v1883_v26 }
 0x2b6   :  { %v674_v50 = vsel %vm671_vm1, %v673_v53, %v669_v15  ;;  %v729_v17 = vsel %vm728_vm4, %v1340_v2, %v725_v14  ;;  %v692_v53 = vmul.f32 %v1897_v19, %v1883_v26  ;;  %v770_v15 = vadd.f32 %v1888_v51, %v769_v36 }
 0x2b7   :  { %v675_v5 = vmul.f32 %v1741_v38, %v674_v50  ;;  %v678_v38 = vsub.f32 1.0, %v677_v21  ;;  %v734_v20 = vsel %vm731_vm12, %v733_v56, %v729_v17  ;;  %v777_v2 = vand.u32 2147483648, %v1877_v9 }
 0x2b8   :  { %1349 = vrcp.f32 %v1905_v4  ;;  %v693_v50 = vsub.f32 1.0, %v692_v53  ;;  %v735_v49 = vmul.f32 %v1773_v32, %v734_v20  ;;  %v1925_v14 = vperm.slane %v1872_v55, 6 }
 0x2b9   :  { %963 = vperm.xlu2 %1292, %v675_v5   ;;  %v679_v5 = vmul.f32 %v1890_v7, %v678_v38  ;;  %v702_v36 = vand.u32 2147483648, %v1883_v26  ;;  %v774_v9 = vsel %vm1927_vm15, %v1888_v51, %v770_v15  ;;  %v778_v55 = vor.u32 1.1754944e-38, %v777_v2 }
 0x2ba   :  { %v685_v56 = vand.u32 2147483647, %v1880_v28  ;;  %v694_v38 = vmul.f32 %v1897_v19, %v693_v50  ;;  %v737_v20 = vmul.f32 %v1918_v18, %v1893_v48  ;;  %vm776_vm1 = vcmp.eq.f32.partialorder %v775_v40, 8.507059e+37 }
 0x2bb   :  { %v779_v2 = vsel %vm776_vm1, %v778_v55, %v774_v9  ;;  %v687_v50 = vand.u32 2147483648, %v1880_v28  ;;  %vm697_vm12 = vweird.f32 %v1897_v19 }
 0x2bc   :  { %vm1966_vm4 = vcmp.eq.f32.partialorder %v685_v56, 8.507059e+37  ;;  %v1972_v10 = vadd.f32 %v1897_v19, %v694_v38  ;;  %v738_v9 = vsub.f32 1.0, %v737_v20  ;;  %vm2004_vm14 = vmor %vm696_vm0, %vm697_vm12 }
 0x2bd   :  { %v1909_v1 = vpop.xlane.xlu2 %613  ;;  %v688_v20 = vor.u32 1.1754944e-38, %v687_v50 }
 0x2be   :  { %v1916_v52 = vperm.slane %v1909_v1, 2  ;;  %v1935_v32 = vperm.slane %v1909_v1, 5  ;;  %v1942_v53 = vperm.slane %v1909_v1, 6  ;;  %v1953_v51 = vpop.eup %1349  ;;  %v1980_v55 = vperm.slane %v1909_v1, 0 }
 0x2bf   :  { %v1988_v38 = vmul.f32 %v1953_v51, %v1905_v4  ;;  %v1996_v58 = vperm.slane %v1909_v1, 1  ;;  %v2021_v37 = vmul.f32 %v1918_v18, %v738_v9  ;;  %v2031_v28 = vperm.slane %v1909_v1, 3 }
 0x2c0   :  { %1351 = vrcp.f32 %v1916_v52  ;;  %v820_v50 = vand.u32 2147483647, %v1916_v52  ;;  %v822_v22 = vand.u32 2147483648, %v1916_v52  ;;  %vm816_vm15 = vweird.f32 %v1916_v52 }
 0x2c1   :  { %983 = vperm.xlu2 %1292, %v735_v49   ;;  %v680_v49 = vadd.f32 %v1890_v7, %v679_v5  ;;  %1353 = vrcp.f32 %v1925_v14  ;;  %v1964_v5 = vor.u32 1.1754944e-38, %v702_v36  ;;  %v780_v36 = vmul.f32 %v1779_v33, %v779_v2 }
 0x2c2   :  { %1355 = vrcp.f32 %v1935_v32  ;;  %vm2040_vm1 = vcmp.eq.f32.partialorder %v820_v50, 8.507059e+37  ;;  %vm861_vm2 = vweird.f32 %v1935_v32  ;;  %v865_v12 = vand.u32 2147483647, %v1935_v32 }
 0x2c3   :  { %v1948_v17 = vpop.xlane.xlu1 %616  ;;  %1357 = vrcp.f32 %v1942_v53  ;;  %v684_v56 = vsel %vm1975_vm13, %v1890_v7, %v680_v49  ;;  %v823_v25 = vor.u32 1.1754944e-38, %v822_v22 }
 0x2c4   :  { %v1957_v15 = vperm.slane %v1948_v17, 0  ;;  %v1962_v40 = vperm.slane %v1948_v17, 1  ;;  %v1991_v59 = vperm.slane %v1948_v17, 3 }
 0x2c6   :  { %v1352_v61 = vpop.eup %1351  ;;  %1359 = vrcp.f32 %v1957_v15  ;;  %v925_v8 = vand.u32 2147483647, %v1962_v40  ;;  %v912_v23 = vand.u32 2147483648, %v1957_v15 }
 0x2c7   :  { %1361 = vrcp.f32 %v1962_v40  ;;  %v812_v33 = vmul.f32 %v1352_v61, %v1916_v52  ;;  %v2009_v2 = vpop.eup %1353  ;;  %vm817_vm0 = vweird.f32 %v1352_v61 }
 0x2c8   :  { %v2023_v41 = vpop.eup %1355  ;;  %1363 = vrcp.f32 %v1980_v55  ;;  %vm818_vm3 = vmor %vm816_vm15, %vm817_vm0  ;;  %vm906_vm0 = vweird.f32 %v1957_v15  ;;  %vm926_vm8 = vcmp.eq.f32.partialorder %v925_v8, 8.507059e+37  ;;  %v752_v7 = vmul.f32 %v2009_v2, %v1925_v14 }
 0x2c9   :  { %998 = vperm.xlu2 %1292, %v780_v36   ;;  %v2018_v36 = vsel %vm1966_vm4, %v688_v20, %v684_v56  ;;  %v813_v49 = vsub.f32 1.0, %v812_v33  ;;  %v2028_v43 = vpop.eup %1357  ;;  %1365 = vrcp.f32 %v1991_v59  ;;  %v857_v21 = vmul.f32 %v2023_v41, %v1935_v32 }
 0x2ca   :  { %1367 = vrcp.f32 %v1996_v58  ;;  %v872_v56 = vmul.f32 %v2028_v43, %v1942_v53  ;;  %vm862_vm4 = vweird.f32 %v2023_v41  ;;  %vm877_vm7 = vweird.f32 %v2028_v43 }
 0x2cb   :  { %v814_v9 = vmul.f32 %v1352_v61, %v813_v49  ;;  %v858_v57 = vsub.f32 1.0, %v857_v21  ;;  %v867_v49 = vand.u32 2147483648, %v1935_v32  ;;  %v927_v21 = vand.u32 2147483648, %v1962_v40 }
 0x2cc   :  { %v1360_v20 = vpop.eup %1359  ;;  %v873_v22 = vsub.f32 1.0, %v872_v56  ;;  %1369 = vrcp.f32 %v2031_v28 }
 0x2cd   :  { %v1362_v46 = vpop.eup %1361  ;;  %v815_v62 = vadd.f32 %v1352_v61, %v814_v9  ;;  %v902_v31 = vmul.f32 %v1360_v20, %v1957_v15  ;;  %v859_v45 = vmul.f32 %v2023_v41, %v858_v57  ;;  %vm907_vm12 = vweird.f32 %v1360_v20 }
 0x2ce   :  { %v917_v50 = vmul.f32 %v1362_v46, %v1962_v40  ;;  %v2054_v60 = vpop.eup %1363  ;;  %vm922_vm15 = vweird.f32 %v1362_v46  ;;  %v868_v56 = vor.u32 1.1754944e-38, %v867_v49 }
 0x2cf   :  { %v819_v34 = vsel %vm818_vm3, %v1352_v61, %v815_v62  ;;  %v903_v9 = vsub.f32 1.0, %v902_v31  ;;  %v2057_v30 = vpop.eup %1365  ;;  %v860_v3 = vadd.f32 %v2023_v41, %v859_v45  ;;  %v910_v31 = vand.u32 2147483647, %v1957_v15 }
 0x2d0   :  { %v824_v52 = vsel %vm2040_vm1, %v823_v25, %v819_v34  ;;  %v918_v35 = vsub.f32 1.0, %v917_v50  ;;  %v2063_v54 = vpop.eup %1367  ;;  %v2389_v61 = vand.u32 2147483647, %v1883_v26  ;;  %vm2078_vm1 = vmor %vm861_vm2, %vm862_vm4  ;;  %vm2082_vm3 = vcmp.eq.f32.partialorder %v865_v12, 8.507059e+37 }
 0x2d1   :  { %v825_v57 = vmul.f32 %v1807_v16, %v824_v52  ;;  %v904_v44 = vmul.f32 %v1360_v20, %v903_v9  ;;  %v874_v26 = vmul.f32 %v2028_v43, %v873_v22  ;;  %v947_v32 = vmul.f32 %v2057_v30, %v1991_v59  ;;  %vm908_vm4 = vmor %vm906_vm0, %vm907_vm12 }
 0x2d2   :  { %vm2069_vm13 = vcmp.eq.f32.partialorder %v2389_v61, 8.507059e+37  ;;  %v919_v25 = vmul.f32 %v1362_v46, %v918_v35  ;;  %v864_v35 = vsel %vm2078_vm1, %v2023_v41, %v860_v3  ;;  %vm921_vm2 = vweird.f32 %v1962_v40  ;;  %vm2152_vm12 = vmor %vm741_vm10, %vm742_vm11 }
 0x2d3   :  { %1013 = vperm.xlu2 %1292, %v825_v57   ;;  %v905_v16 = vadd.f32 %v1360_v20, %v904_v44  ;;  %v913_v12 = vor.u32 1.1754944e-38, %v912_v23  ;;  %vm923_vm9 = vmor %vm921_vm2, %vm922_vm15  ;;  %v928_v44 = vor.u32 1.1754944e-38, %v927_v21  ;;  %vm911_vm1 = vcmp.eq.f32.partialorder %v910_v31, 8.507059e+37 }
 0x2d4   :  { %v920_v15 = vadd.f32 %v1362_v46, %v919_v25  ;;  %v869_v50 = vsel %vm2082_vm3, %v868_v56, %v864_v35  ;;  %v875_v23 = vadd.f32 %v2028_v43, %v874_v26  ;;  %v948_v49 = vsub.f32 1.0, %v947_v32 }
 0x2d5   :  { %v909_v33 = vsel %vm908_vm4, %v1360_v20, %v905_v16  ;;  %v882_v20 = vand.u32 2147483648, %v1942_v53  ;;  %v870_v22 = vmul.f32 %v1819_v13, %v869_v50  ;;  %v782_v52 = vmul.f32 %v2054_v60, %v1980_v55 }
 0x2d6   :  { %v924_v41 = vsel %vm923_vm9, %v1362_v46, %v920_v15  ;;  %v914_v3 = vsel %vm911_vm1, %v913_v12, %v909_v33  ;;  %v2396_v46 = vsub.f32 1.0, %v1988_v38  ;;  %v2400_v57 = vand.u32 2147483648, %v1893_v48 }
 0x2d7   :  { %v929_v40 = vsel %vm926_vm8, %v928_v44, %v924_v41  ;;  %v915_v9 = vmul.f32 %v1794_v6, %v914_v3  ;;  %vm876_vm8 = vweird.f32 %v1942_v53  ;;  %v880_v6 = vand.u32 2147483647, %v1942_v53 }
 0x2d8   :  { %v930_v8 = vmul.f32 %v1813_v63, %v929_v40  ;;  %v709_v21 = vmul.f32 %v1953_v51, %v2396_v46  ;;  %v2397_v63 = vsel %vm2004_vm14, %v1897_v19, %v1972_v10  ;;  %vm2123_vm9 = vmor %vm876_vm8, %vm877_vm7  ;;  %v740_v53 = vadd.f32 %v1918_v18, %v2021_v37 }
 0x2d9   :  { %1043 = vperm.xlu1 %1294, %v915_v9   ;;  %v704_v38 = vsel %vm2069_vm13, %v1964_v5, %v2397_v63  ;;  %v748_v31 = vor.u32 1.1754944e-38, %v2400_v57  ;;  %v2134_v10 = vperm.slane %v1909_v1, 4  ;;  %v690_v19 = vmul.f32 %v1743_v39, %v2018_v36 }
 0x2da   :  { %1048 = vperm.xlu0 %1293, %v930_v8   ;;  %v879_v5 = vsel %vm2123_vm9, %v2028_v43, %v875_v23  ;;  %v949_v61 = vmul.f32 %v2057_v30, %v948_v49  ;;  %v2143_v37 = vperm.slane %v1948_v17, 2  ;;  %v883_v62 = vor.u32 1.1754944e-38, %v882_v20  ;;  %v2157_v17 = vpop.eup %1369 }
 0x2db   :  { %1028 = vperm.xlu2 %1292, %v870_v22   ;;  %v710_v25 = vadd.f32 %v1953_v51, %v709_v21  ;;  %vm712_vm7 = vweird.f32 %v1953_v51  ;;  %v705_v45 = vmul.f32 %v1748_v42, %v704_v38  ;;  %vm881_vm14 = vcmp.eq.f32.partialorder %v880_v6, 8.507059e+37 }
 0x2dc   :  { %vm711_vm13 = vweird.f32 %v1905_v4  ;;  %v783_v43 = vsub.f32 1.0, %v782_v52  ;;  %v884_v36 = vsel %vm881_vm14, %v883_v62, %v879_v5  ;;  %v744_v34 = vsel %vm2152_vm12, %v1918_v18, %v740_v53 }
 0x2dd   :  { %v717_v42 = vand.u32 2147483648, %v1905_v4  ;;  %v753_v16 = vsub.f32 1.0, %v752_v7  ;;  %1371 = vrcp.f32 %v2134_v10  ;;  %vm2164_vm15 = vmor %vm711_vm13, %vm712_vm7  ;;  %v715_v26 = vand.u32 2147483647, %v1905_v4 }
 0x2de   :  { %v950_v32 = vadd.f32 %v2057_v30, %v949_v61  ;;  %vm952_vm10 = vweird.f32 %v2057_v30  ;;  %1373 = vrcp.f32 %v2143_v37  ;;  %v714_v18 = vsel %vm2164_vm15, %v1953_v51, %v710_v25 }
 0x2df   :  { %v955_v15 = vand.u32 2147483647, %v1991_v59  ;;  %v957_v12 = vand.u32 2147483648, %v1991_v59  ;;  %v885_v56 = vmul.f32 %v1800_v24, %v884_v36  ;;  %vm951_vm11 = vweird.f32 %v1991_v59 }
 0x2e0   :  { %v784_v4 = vmul.f32 %v2054_v60, %v783_v43  ;;  %v827_v44 = vmul.f32 %v2157_v17, %v2031_v28  ;;  %v2405_v33 = vand.u32 2147483647, %v1893_v48  ;;  %v718_v41 = vor.u32 1.1754944e-38, %v717_v42  ;;  %vm2184_vm3 = vmor %vm951_vm11, %vm952_vm10 }
 0x2e1   :  { %973 = vperm.xlu1 %1294, %v705_v45   ;;  %v754_v3 = vmul.f32 %v2009_v2, %v753_v16  ;;  %v797_v24 = vmul.f32 %v2063_v54, %v1996_v58  ;;  %vm716_vm2 = vcmp.eq.f32.partialorder %v715_v26, 8.507059e+37  ;;  %v954_v50 = vsel %vm2184_vm3, %v2057_v30, %v950_v32 }
 0x2e2   :  { %968 = vperm.xlu0 %1293, %v690_v19   ;;  %vm746_vm0 = vcmp.eq.f32.partialorder %v2405_v33, 8.507059e+37  ;;  %v2195_v48 = vperm.slane %v1909_v1, 7  ;;  %v719_v40 = vsel %vm716_vm2, %v718_v41, %v714_v18  ;;  %vm956_vm4 = vcmp.eq.f32.partialorder %v955_v15, 8.507059e+37  ;;  %v2411_v41 = vld [vmem:[#allocation26_spill] sm:$0xff] }
 0x2e3   :  { %1033 = vperm.xlu2 %1292, %v885_v56   ;;  %v749_v59 = vsel %vm746_vm0, %v748_v31, %v744_v34  ;;  %v958_v9 = vor.u32 1.1754944e-38, %v957_v12  ;;  %v2197_v23 = vpop.eup %1371  ;;  %v785_v49 = vadd.f32 %v2054_v60, %v784_v4  ;;  %vm787_vm1 = vweird.f32 %v2054_v60  ;;  %v2410_v56 = vld [vmem:[#allocation25_spill] sm:$0xff] }
 0x2e4   :  { %v792_v8 = vand.u32 2147483648, %v1980_v55  ;;  %v828_v20 = vsub.f32 1.0, %v827_v44  ;;  %v2202_v46 = vpop.eup %1373  ;;  %v755_v30 = vadd.f32 %v2009_v2, %v754_v3  ;;  %vm757_vm8 = vweird.f32 %v2009_v2 }
 0x2e5   :  { %v959_v21 = vsel %vm956_vm4, %v958_v9, %v954_v50  ;;  %v798_v1 = vsub.f32 1.0, %v797_v24  ;;  %v750_v22 = vmul.f32 %v1764_v27, %v749_v59  ;;  %vm786_vm9 = vweird.f32 %v1980_v55 }
 0x2e6   :  { %v790_v6 = vand.u32 2147483647, %v1980_v55  ;;  %v762_v52 = vand.u32 2147483648, %v1925_v14  ;;  %1375 = vrcp.f32 %v2195_v48  ;;  %v720_v63 = vmul.f32 %v1759_v0, %v719_v40  ;;  %vm2212_vm7 = vmor %vm786_vm9, %vm787_vm1 }
 0x2e7   :  { %vm756_vm14 = vweird.f32 %v1925_v14  ;;  %v760_v13 = vand.u32 2147483647, %v1925_v14  ;;  %v960_v27 = vmul.f32 %v1826_v11, %v959_v21  ;;  %v789_v55 = vsel %vm2212_vm7, %v2054_v60, %v785_v49  ;;  %v2413_v21 = vld [vmem:[#allocation27_spill] sm:$0xff] }
 0x2e8   :  { %vm758_vm12 = vmor %vm756_vm14, %vm757_vm8  ;;  %v829_v53 = vmul.f32 %v2157_v17, %v828_v20  ;;  %v932_v0 = vmul.f32 %v2202_v46, %v2143_v37  ;;  %v793_v57 = vor.u32 1.1754944e-38, %v792_v8  ;;  %v799_v7 = vmul.f32 %v2063_v54, %v798_v1 }
 0x2e9   :  { %988 = vperm.xlu1 %1294, %v750_v22   ;;  %v759_v31 = vsel %vm758_vm12, %v2009_v2, %v755_v30  ;;  %v842_v14 = vmul.f32 %v2197_v23, %v2134_v10  ;;  %vm791_vm13 = vcmp.eq.f32.partialorder %v790_v6, 8.507059e+37  ;;  %v763_v11 = vor.u32 1.1754944e-38, %v762_v52  ;;  %v2414_v52 = vld [vmem:[#allocation29_spill] sm:$0xff] }
 0x2ea   :  { %978 = vperm.xlu0 %1293, %v720_v63   ;;  %v794_v19 = vsel %vm791_vm13, %v793_v57, %v789_v55  ;;  %vm761_vm15 = vcmp.eq.f32.partialorder %v760_v13, 8.507059e+37  ;;  %v830_v5 = vadd.f32 %v2157_v17, %v829_v53  ;;  %vm832_vm10 = vweird.f32 %v2157_v17  ;;  %v2415_v57 = vld [vmem:[#allocation5_spill] sm:$0xff] }
 0x2eb   :  { %1058 = vperm.xlu2 %1292, %v960_v27   ;;  %v764_v60 = vsel %vm761_vm15, %v763_v11, %v759_v31  ;;  %v933_v61 = vsub.f32 1.0, %v932_v0  ;;  %v837_v2 = vand.u32 2147483648, %v2031_v28  ;;  %v800_v25 = vadd.f32 %v2063_v54, %v799_v7 }
 0x2ec   :  { %v2231_v62 = vpop.eup %1375  ;;  %vm802_vm11 = vweird.f32 %v2063_v54  ;;  %v843_v45 = vsub.f32 1.0, %v842_v14  ;;  %v795_v39 = vmul.f32 %v1771_v29, %v794_v19  ;;  %vm831_vm0 = vweird.f32 %v2031_v28  ;;  %v2416_v14 = vld [vmem:[#allocation16_spill] sm:$0xff] }
 0x2ed   :  { %v835_v43 = vand.u32 2147483647, %v2031_v28  ;;  %v807_v36 = vand.u32 2147483648, %v1996_v58  ;;  %v765_v34 = vmul.f32 %v1788_v47, %v764_v60  ;;  %vm833_vm3 = vmor %vm831_vm0, %vm832_vm10  ;;  %vm801_vm2 = vweird.f32 %v1996_v58  ;;  %v2417_v60 = vld [vmem:[#allocation11_spill] sm:$0xff] }
 0x2ee   :  { %v805_v42 = vand.u32 2147483647, %v1996_v58  ;;  %v834_v16 = vsel %vm833_vm3, %v2157_v17, %v830_v5  ;;  %vm803_vm4 = vmor %vm801_vm2, %vm802_vm11  ;;  %v934_v35 = vmul.f32 %v2202_v46, %v933_v61  ;;  %v838_v29 = vor.u32 1.1754944e-38, %v837_v2 }
 0x2ef   :  { %v804_v26 = vsel %vm803_vm4, %v2063_v54, %v800_v25  ;;  %v844_v28 = vmul.f32 %v2197_v23, %v843_v45  ;;  %v887_v47 = vmul.f32 %v2231_v62, %v2195_v48  ;;  %vm836_vm1 = vcmp.eq.f32.partialorder %v835_v43, 8.507059e+37 }
 0x2f0   :  { %v808_v32 = vor.u32 1.1754944e-38, %v807_v36  ;;  %v839_v18 = vsel %vm836_vm1, %v838_v29, %v834_v16  ;;  %vm806_vm8 = vcmp.eq.f32.partialorder %v805_v42, 8.507059e+37  ;;  %v935_v15 = vadd.f32 %v2202_v46, %v934_v35 }
 0x2f1   :  { %1003 = vperm.xlu1 %1294, %v795_v39   ;;  %vm937_vm9 = vweird.f32 %v2202_v46  ;;  %v942_v17 = vand.u32 2147483648, %v2143_v37  ;;  %v845_v12 = vadd.f32 %v2197_v23, %v844_v28  ;;  %vm847_vm7 = vweird.f32 %v2197_v23 }
 0x2f2   :  { %993 = vperm.xlu0 %1293, %v765_v34   ;;  %v809_v58 = vsel %vm806_vm8, %v808_v32, %v804_v26  ;;  %v888_v54 = vsub.f32 1.0, %v887_v47  ;;  %v840_v4 = vmul.f32 %v2410_v56, %v839_v18  ;;  %vm936_vm14 = vweird.f32 %v2143_v37  ;;  %v2419_v34 = vld [vmem:[#allocation12_spill] sm:$0xff]  ;;  %v2420_v18 = vld [vmem:[#allocation6_spill] sm:$0xff] }
 0x2f3   :  { %v940_v44 = vand.u32 2147483647, %v2143_v37  ;;  %v852_v33 = vand.u32 2147483648, %v2134_v10  ;;  %v810_v51 = vmul.f32 %v2411_v41, %v809_v58  ;;  %vm938_vm12 = vmor %vm936_vm14, %vm937_vm9  ;;  %vm846_vm13 = vweird.f32 %v2134_v10 }
 0x2f4   :  { %v850_v3 = vand.u32 2147483647, %v2134_v10  ;;  %v939_v24 = vsel %vm938_vm12, %v2202_v46, %v935_v15  ;;  %vm848_vm15 = vmor %vm846_vm13, %vm847_vm7  ;;  %v943_v59 = vor.u32 1.1754944e-38, %v942_v17  ;;  %v889_v40 = vmul.f32 %v2231_v62, %v888_v54  ;;  %v2412_v10 = vld [vmem:[#allocation28_spill] sm:$0xff]  ;;  %v2421_v54 = vld [vmem:[#allocation15_spill] sm:$0xff] }
 0x2f5   :  { %v849_v50 = vsel %vm848_vm15, %v2197_v23, %v845_v12  ;;  %vm941_vm10 = vcmp.eq.f32.partialorder %v940_v44, 8.507059e+37  ;;  %v853_v37 = vor.u32 1.1754944e-38, %v852_v33  ;;  %vm892_vm0 = vweird.f32 %v2231_v62 }
 0x2f6   :  { %v944_v9 = vsel %vm941_vm10, %v943_v59, %v939_v24  ;;  %vm851_vm11 = vcmp.eq.f32.partialorder %v850_v3, 8.507059e+37  ;;  %v890_v8 = vadd.f32 %v2231_v62, %v889_v40  ;;  %v897_v46 = vand.u32 2147483648, %v2195_v48 }
 0x2f7   :  { %v854_v49 = vsel %vm851_vm11, %v853_v37, %v849_v50  ;;  %v945_v20 = vmul.f32 %v2412_v10, %v944_v9  ;;  %vm891_vm3 = vweird.f32 %v2195_v48  ;;  %v895_v23 = vand.u32 2147483647, %v2195_v48  ;;  %v2422_v9 = vld [vmem:[#allocation23_spill] sm:$0xff] }
 0x2f8   :  { %v855_v30 = vmul.f32 %v2413_v21, %v854_v49  ;;  %vm893_vm2 = vmor %vm891_vm3, %vm892_vm0  ;;  %v898_v22 = vor.u32 1.1754944e-38, %v897_v46  ;;  %v2423_v21 = vld [vmem:[#allocation19_spill] sm:$0xff]  ;;  %vm2429_vm1 = vcmask 1043459   ;;  %vm2433_vm8 = vcmask 1044484  }
 0x2f9   :  { %1018 = vperm.xlu1 %1294, %v840_v4   ;;  %v894_v1 = vsel %vm893_vm2, %v2231_v62, %v890_v8  ;;  %vm896_vm4 = vcmp.eq.f32.partialorder %v895_v23, 8.507059e+37  ;;  %v2418_v62 = vld [vmem:[#allocation8_spill] sm:$0xff]  ;;  %vm2434_vm9 = vcmask 1045509   ;;  %vm2435_vm7 = vcmask 1046534   ;;  %vm2440_vm12 = vmmov %vm2429_vm1 }
 0x2fa   :  { %1008 = vperm.xlu0 %1293, %v810_v51   ;;  %v899_v6 = vsel %vm896_vm4, %v898_v22, %v894_v1  ;;  %v2424_v22 = vld [vmem:[#allocation14_spill] sm:$0xff]  ;;  %vm2436_vm14 = vcmask 1047559   ;;  %vm2441_vm13 = vmmov %vm2429_vm1 }
 0x2fb   :  { %v900_v63 = vmul.f32 %v2414_v52, %v899_v6  ;;  %vm2442_vm15 = vmmov %vm2433_vm8 }
 0x2fc   :  { %vm2445_vm10 = vmmov %vm2436_vm14 }
 0x301   :  { %1053 = vperm.xlu1 %1294, %v945_v20  }
 0x302   :  { %1023 = vperm.xlu0 %1293, %v855_v30  }
 0x30a   :  { %1038 = vperm.xlu0 %1293, %v900_v63  }
 0x313   :  { %v964_v38 = vpop.permute.xlu2 %963 }
 0x314   :  { %v1061_v31 = vmul.f32 %v964_v38, %v2415_v57  ;;  %v2425_v38 = vld [vmem:[#allocation7_spill] sm:$0xff]  ;;  %v2426_v57 = vld [vmem:[#allocation9_spill] sm:$0xff] }
 0x316   :  { %v1081_v7 = vrot.slane %v1061_v31, 4 }
 0x318   :  { %v1082_v25 = vadd.f32 %v1081_v7, %v1061_v31 }
 0x31a   :  { %v1083_v29 = vrot.slane %v1082_v25, 2 }
 0x31b   :  { %v984_v13 = vpop.permute.xlu2 %983 }
 0x31c   :  { %v1065_v11 = vmul.f32 %v984_v13, %v2416_v14  ;;  %v1084_v4 = vadd.f32 %v1083_v29, %v1082_v25 }
 0x31e   :  { %v1105_v45 = vrot.slane %v1065_v11, 4  ;;  %v1085_v40 = vrot.slane %v1084_v4, 1 }
 0x320   :  { %v1106_v26 = vadd.f32 %v1105_v45, %v1065_v11  ;;  %v1086_v7 = vadd.f32 %v1085_v40, %v1084_v4 }
 0x322   :  { %v1107_v44 = vrot.slane %v1106_v26, 2 }
 0x323   :  { %v999_v27 = vpop.permute.xlu2 %998 }
 0x324   :  { %v1068_v42 = vmul.f32 %v999_v27, %v2419_v34  ;;  %v1108_v37 = vadd.f32 %v1107_v44, %v1106_v26  ;;  %v2428_v34 = vld [vmem:[#allocation18_spill] sm:$0xff] }
 0x326   :  { %v1123_v17 = vrot.slane %v1068_v42, 4  ;;  %v1109_v14 = vrot.slane %v1108_v37, 1 }
 0x328   :  { %v1124_v59 = vadd.f32 %v1123_v17, %v1068_v42  ;;  %v2430_v17 = vld [vmem:[#allocation10_spill] sm:$0xff] }
 0x32a   :  { %v1125_v63 = vrot.slane %v1124_v59, 2 }
 0x32c   :  { %v1126_v45 = vadd.f32 %v1125_v63, %v1124_v59 }
 0x32d   :  { %v1014_v55 = vpop.permute.xlu2 %1013 }
 0x32e   :  { %v1071_v13 = vmul.f32 %v1014_v55, %v2425_v38 }
 0x335   :  { %v2274_v48 = vpop.permute.xlu2 %1028 }
 0x336   :  { %v1074_v42 = vmul.f32 %v2274_v48, %v2428_v34 }
 0x338   :  { %v1159_v48 = vrot.slane %v1074_v42, 4 }
 0x33d   :  { %v2280_v16 = vpop.permute.xlu2 %1033 }
 0x345   :  { %v1059_v8 = vpop.permute.xlu2 %1058 }
 0x34b   :  { %v1044_v53 = vpop.permute.xlu1 %1043 }
 0x34c   :  { %v1049_v0 = vpop.permute.xlu0 %1048  ;;  %v1077_v49 = vmul.f32 %v1044_v53, %v2422_v9  ;;  %v2427_v53 = vld [vmem:[#allocation24_spill] sm:$0xff] }
 0x34d   :  { %v1078_v30 = vmul.f32 %v1049_v0, %v2423_v21  ;;  %v1080_v11 = vmul.f32 %v1059_v8, %v2427_v53 }
 0x353   :  { %v974_v19 = vpop.permute.xlu1 %973 }
 0x354   :  { %v1063_v5 = vmul.f32 %v974_v19, %v2417_v60  ;;  %v969_v61 = vpop.permute.xlu0 %968  ;;  %v1177_v19 = vrot.slane %v1077_v49, 4 }
 0x355   :  { %v1062_v2 = vmul.f32 %v969_v61, %v2418_v62  ;;  %v1183_v62 = vrot.slane %v1078_v30, 4 }
 0x356   :  { %v1093_v39 = vrot.slane %v1063_v5, 4  ;;  %v1178_v29 = vadd.f32 %v1177_v19, %v1077_v49 }
 0x357   :  { %v1087_v43 = vrot.slane %v1062_v2, 4 }
 0x358   :  { %v1094_v36 = vadd.f32 %v1093_v39, %v1063_v5  ;;  %v1141_v39 = vrot.slane %v1071_v13, 4  ;;  %v1179_v49 = vrot.slane %v1178_v29, 2 }
 0x359   :  { %v1088_v35 = vadd.f32 %v1087_v43, %v1062_v2 }
 0x35a   :  { %v1095_v28 = vrot.slane %v1094_v36, 2  ;;  %v1142_v4 = vadd.f32 %v1141_v39, %v1071_v13 }
 0x35b   :  { %v1089_v47 = vrot.slane %v1088_v35, 2  ;;  %v989_v32 = vpop.permute.xlu1 %988 }
 0x35c   :  { %v1066_v58 = vmul.f32 %v989_v32, %v2420_v18  ;;  %v979_v15 = vpop.permute.xlu0 %978  ;;  %v1096_v41 = vadd.f32 %v1095_v28, %v1094_v36  ;;  %v1110_v36 = vadd.f32 %v1109_v14, %v1108_v37  ;;  %v1184_v18 = vadd.f32 %v1183_v62, %v1078_v30 }
 0x35d   :  { %v1090_v12 = vadd.f32 %v1089_v47, %v1088_v35  ;;  %v1064_v56 = vmul.f32 %v979_v15, %v2421_v54  ;;  %v1195_v35 = vrot.slane %v1080_v11, 4 }
 0x35e   :  { %v1111_v33 = vrot.slane %v1066_v58, 4  ;;  %v1097_v10 = vrot.slane %v1096_v41, 1  ;;  %v1185_v8 = vrot.slane %v1184_v18, 2 }
 0x35f   :  { %v1099_v51 = vrot.slane %v1064_v56, 4  ;;  %v1091_v3 = vrot.slane %v1090_v12, 1 }
 0x360   :  { %v1112_v24 = vadd.f32 %v1111_v33, %v1066_v58  ;;  %v1098_v60 = vadd.f32 %v1097_v10, %v1096_v41  ;;  %v2431_v33 = vld [vmem:[#allocation17_spill] sm:$0xff] }
 0x361   :  { %v1100_v50 = vadd.f32 %v1099_v51, %v1064_v56  ;;  %v1092_v23 = vadd.f32 %v1091_v3, %v1090_v12  ;;  %v1127_v56 = vrot.slane %v1126_v45, 1  ;;  %v2432_v51 = vld [vmem:[#allocation21_spill] sm:$0xff] }
 0x362   :  { %v1113_v1 = vrot.slane %v1112_v24, 2  ;;  %v1075_v3 = vmul.f32 %v2280_v16, %v2432_v51 }
 0x363   :  { %v1101_v20 = vrot.slane %v1100_v50, 2  ;;  %v1004_v46 = vpop.permute.xlu1 %1003  ;;  %v1221_v2 = vsel %vm348_vm5, %v1092_v23, %v1086_v7  ;;  %v1143_v23 = vrot.slane %v1142_v4, 2  ;;  %v2437_v7 = vld [vmem:[#allocation22_spill] sm:$0xff] }
 0x364   :  { %v1069_v6 = vmul.f32 %v1004_v46, %v2424_v22  ;;  %v994_v52 = vpop.permute.xlu0 %993  ;;  %v1114_v25 = vadd.f32 %v1113_v1, %v1112_v24  ;;  %v1222_v26 = vsel %vm350_vm6, %v1098_v60, %v1221_v2  ;;  %v1196_v24 = vadd.f32 %v1195_v35, %v1080_v11  ;;  %v2438_v60 = vld [vmem:[#allocation13_spill] sm:$0xff] }
 0x365   :  { %v1102_v27 = vadd.f32 %v1101_v20, %v1100_v50  ;;  %v1067_v31 = vmul.f32 %v994_v52, %v2426_v57  ;;  %v1128_v20 = vadd.f32 %v1127_v56, %v1126_v45  ;;  %v1160_v1 = vadd.f32 %v1159_v48, %v1074_v42 }
 0x366   :  { %v1129_v61 = vrot.slane %v1069_v6, 4  ;;  %v1115_v58 = vrot.slane %v1114_v25, 1  ;;  %v1165_v22 = vrot.slane %v1075_v3, 4  ;;  %v1197_v16 = vrot.slane %v1196_v24, 2 }
 0x367   :  { %v1103_v5 = vrot.slane %v1102_v27, 1  ;;  %v1117_v0 = vrot.slane %v1067_v31, 4  ;;  %v1186_v57 = vadd.f32 %v1185_v8, %v1184_v18 }
 0x368   :  { %v1130_v28 = vadd.f32 %v1129_v61, %v1069_v6  ;;  %v1116_v10 = vadd.f32 %v1115_v58, %v1114_v25  ;;  %v1144_v61 = vadd.f32 %v1143_v23, %v1142_v4  ;;  %v1166_v2 = vadd.f32 %v1165_v22, %v1075_v3 }
 0x369   :  { %v1104_v43 = vadd.f32 %v1103_v5, %v1102_v27  ;;  %v1118_v55 = vadd.f32 %v1117_v0, %v1067_v31  ;;  %v1180_v27 = vadd.f32 %v1179_v49, %v1178_v29  ;;  %v1161_v0 = vrot.slane %v1160_v1, 2 }
 0x36a   :  { %v1131_v40 = vrot.slane %v1130_v28, 2 }
 0x36b   :  { %v1119_v47 = vrot.slane %v1118_v55, 2  ;;  %v1019_v32 = vpop.permute.xlu1 %1018  ;;  %v1223_v15 = vsel %vm2429_vm1, %v1104_v43, %v1222_v26  ;;  %v1198_v43 = vadd.f32 %v1197_v16, %v1196_v24  ;;  %v1145_v26 = vrot.slane %v1144_v61, 1 }
 0x36c   :  { %v1072_v12 = vmul.f32 %v1019_v32, %v2430_v17  ;;  %v1009_v54 = vpop.permute.xlu0 %1008  ;;  %v1224_v50 = vsel %vm2433_vm8, %v1110_v36, %v1223_v15  ;;  %v1132_v52 = vadd.f32 %v1131_v40, %v1130_v28  ;;  %v1187_v36 = vrot.slane %v1186_v57, 1 }
 0x36d   :  { %v1120_v44 = vadd.f32 %v1119_v47, %v1118_v55  ;;  %v1070_v41 = vmul.f32 %v1009_v54, %v2431_v33  ;;  %v1225_v6 = vsel %vm2434_vm9, %v1116_v10, %v1224_v50  ;;  %v1181_v55 = vrot.slane %v1180_v27, 1 }
 0x36e   :  { %v1147_v59 = vrot.slane %v1072_v12, 4  ;;  %v1133_v25 = vrot.slane %v1132_v52, 1  ;;  %v1162_v47 = vadd.f32 %v1161_v0, %v1160_v1  ;;  %v1167_v32 = vrot.slane %v1166_v2, 2 }
 0x36f   :  { %v1121_v37 = vrot.slane %v1120_v44, 1  ;;  %v1135_v9 = vrot.slane %v1070_v41, 4  ;;  %v1199_v15 = vrot.slane %v1198_v43, 1  ;;  %v1182_v17 = vadd.f32 %v1181_v55, %v1180_v27 }
 0x370   :  { %v1148_v21 = vadd.f32 %v1147_v59, %v1072_v12  ;;  %v1134_v18 = vadd.f32 %v1133_v25, %v1132_v52  ;;  %v1188_v12 = vadd.f32 %v1187_v36, %v1186_v57  ;;  %v1146_v51 = vadd.f32 %v1145_v26, %v1144_v61 }
 0x371   :  { %v1122_v46 = vadd.f32 %v1121_v37, %v1120_v44  ;;  %v1136_v30 = vadd.f32 %v1135_v9, %v1070_v41  ;;  %v2439_v41 = vld [vmem:[#allocation20_spill] sm:$0xff]  ;;  %v1163_v24 = vrot.slane %v1162_v47, 1  ;;  %v1168_v40 = vadd.f32 %v1167_v32, %v1166_v2 }
 0x372   :  { %v1149_v11 = vrot.slane %v1148_v21, 2  ;;  %v1200_v37 = vadd.f32 %v1199_v15, %v1198_v43  ;;  %v1235_v8 = vsel %vm348_vm5, %v1188_v12, %v1182_v17 }
 0x373   :  { %v1226_v63 = vsel %vm2435_vm7, %v1122_v46, %v1225_v6  ;;  %v1137_v38 = vrot.slane %v1136_v30, 2  ;;  %v1054_v13 = vpop.permute.xlu1 %1053  ;;  %v1169_v22 = vrot.slane %v1168_v40, 1  ;;  %v1164_v16 = vadd.f32 %v1163_v24, %v1162_v47 }
 0x374   :  { %v1227_v31 = vsel %vm2436_vm14, %v1128_v20, %v1226_v63  ;;  %v1079_v14 = vmul.f32 %v1054_v13, %v2437_v7  ;;  %v1024_v53 = vpop.permute.xlu0 %1023  ;;  %v1150_v42 = vadd.f32 %v1149_v11, %v1148_v21 }
 0x375   :  { %1241 = vst [vmem:[#allocation2] sm:$0xff] %v1227_v31  ;;  %v1138_v19 = vadd.f32 %v1137_v38, %v1136_v30  ;;  %v1073_v5 = vmul.f32 %v1024_v53, %v2438_v60  ;;  %v1170_v13 = vadd.f32 %v1169_v22, %v1168_v40 }
 0x376   :  { %v1189_v62 = vrot.slane %v1079_v14, 4  ;;  %v1151_v4 = vrot.slane %v1150_v42, 1 }
 0x377   :  { %v1139_v45 = vrot.slane %v1138_v19, 1  ;;  %v1153_v39 = vrot.slane %v1073_v5, 4 }
 0x378   :  { %v1190_v34 = vadd.f32 %v1189_v62, %v1079_v14  ;;  %v1152_v10 = vadd.f32 %v1151_v4, %v1150_v42 }
 0x379   :  { %v1140_v35 = vadd.f32 %v1139_v45, %v1138_v19  ;;  %v1154_v29 = vadd.f32 %v1153_v39, %v1073_v5 }
 0x37a   :  { %v1191_v28 = vrot.slane %v1190_v34, 2 }
 0x37b   :  { %v1155_v58 = vrot.slane %v1154_v29, 2  ;;  %v1228_v44 = vsel %vm348_vm5, %v1140_v35, %v1134_v18  ;;  %vm2443_vm5 = vmmov %vm2434_vm9 }
 0x37c   :  { %v1192_v54 = vadd.f32 %v1191_v28, %v1190_v34  ;;  %v1039_v56 = vpop.permute.xlu0 %1038  ;;  %v1229_v9 = vsel %vm350_vm6, %v1146_v51, %v1228_v44 }
 0x37d   :  { %v1156_v33 = vadd.f32 %v1155_v58, %v1154_v29  ;;  %v1076_v48 = vmul.f32 %v1039_v56, %v2439_v41  ;;  %v1230_v23 = vsel %vm2441_vm13, %v1152_v10, %v1229_v9 }
 0x37e   :  { %v1193_v3 = vrot.slane %v1192_v54, 1 }
 0x37f   :  { %v1157_v59 = vrot.slane %v1156_v33, 1  ;;  %v1171_v50 = vrot.slane %v1076_v48, 4 }
 0x380   :  { %v1194_v49 = vadd.f32 %v1193_v3, %v1192_v54 }
 0x381   :  { %v1158_v20 = vadd.f32 %v1157_v59, %v1156_v33  ;;  %v1172_v46 = vadd.f32 %v1171_v50, %v1076_v48 }
 0x382   :  { %v1236_v21 = vsel %vm350_vm6, %v1194_v49, %v1235_v8  ;;  %vm2444_vm6 = vmmov %vm2435_vm7 }
 0x383   :  { %v1237_v30 = vsel %vm2440_vm12, %v1200_v37, %v1236_v21  ;;  %v1173_v1 = vrot.slane %v1172_v46, 2  ;;  %v1231_v6 = vsel %vm2442_vm15, %v1158_v20, %v1230_v23 }
 0x384   :  { %1243 = vst [vmem:[#allocation2 + $0x10] sm:$0xf] %v1237_v30  ;;  %v1232_v63 = vsel %vm2443_vm5, %v1164_v16, %v1231_v6 }
 0x385   :  { %v1174_v52 = vadd.f32 %v1173_v1, %v1172_v46  ;;  %v1233_v57 = vsel %vm2444_vm6, %v1170_v13, %v1232_v63 }
 0x387   :  { %v1175_v38 = vrot.slane %v1174_v52, 1 }
 0x389   :  { %v1176_v27 = vadd.f32 %v1175_v38, %v1174_v52 }
 0x38b   :  { %v1234_v31 = vsel %vm2445_vm10, %v1176_v27, %v1233_v57 }
 0x38c   :  { %1242 = vst [vmem:[#allocation2 + $0x8] sm:$0xff] %v1234_v31 }
 0x38d   :  { %1256 = dma.vmem_to_hbm [thread:$0]  %s1249_s2, 384, %s1251_s10, [#allocation3], %s1405_s11, %s1405_s11, %s1406_s12  }
 0x38e   :  { %1401 = dma.done.wait [#allocation3], 384  }
 0x38f   :  { %1402 = vsyncadd [#allocation3], 4294966912 }
 0x390   :  { %1261 = vsyncpa [#allocation3], 1 }

</bundles_post_ra>
